<compile_context>
chip_gen: v7x
topology: tpu7x:2x2x1
jax: 0.10.0
libtpu: 0.0.40
codegen_flags: <defaults>
</compile_context>

<pallas_src>
import functools

import numpy as np

import jax
import jax.numpy as jnp
from jax.experimental import pallas as pl
from jax.experimental.pallas import tpu as pltpu  # noqa: F401  (TPU backend assumed)

NUM_CLASSES = 20
NUM_CH = 2 * 5 + NUM_CLASSES          # 30 channels per cell
TGT_CH = 5 + NUM_CLASSES              # [obj, tx, ty, tw, th, onehot(20)]


# ---------------------------------------------------------------------------
# Pallas kernel: fused per-cell YOLOv1 loss + scalar reduction
# ---------------------------------------------------------------------------
def _yolo_loss_kernel(pred_ref, tgt_ref, out_ref, *,
                      lambda_coord, lambda_noobj, inv_batch):
    pred = pred_ref[...]                      # (Mp, 30) f32
    tgt = tgt_ref[...]                        # (Mp, 25) f32

    obj = tgt[:, 0:1]                         # (Mp, 1)  1.0 if cell owns a gt box
    tb = tgt[:, 1:5]                          # (Mp, 4)  (tx, ty, sqrt(w), sqrt(h))
    tcls = tgt[:, 5:5 + NUM_CLASSES]          # (Mp, 20)

    b1 = pred[:, 0:4]                         # box 1 (x, y, w, h)
    c1 = pred[:, 4:5]                         # box 1 confidence
    b2 = pred[:, 5:9]                         # box 2 (x, y, w, h)
    c2 = pred[:, 9:10]                        # box 2 confidence
    pcls = pred[:, 10:10 + NUM_CLASSES]       # class scores

    tx, ty, tw, th = tb[:, 0:1], tb[:, 1:2], tb[:, 2:3], tb[:, 3:4]

    def iou(box):
        # standard center-format IoU, vectorized over cells
        bx, by, bw, bh = box[:, 0:1], box[:, 1:2], box[:, 2:3], box[:, 3:4]
        xl = jnp.maximum(bx - 0.5 * bw, tx - 0.5 * tw)
        xr = jnp.minimum(bx + 0.5 * bw, tx + 0.5 * tw)
        yt = jnp.maximum(by - 0.5 * bh, ty - 0.5 * th)
        yb = jnp.minimum(by + 0.5 * bh, ty + 0.5 * th)
        iw = jnp.maximum(xr - xl, 0.0)
        ih = jnp.maximum(yb - yt, 0.0)
        inter = iw * ih
        union = bw * bh + tw * th - inter
        return inter / (union + 1e-6)

    iou1 = iou(b1)
    iou2 = iou(b2)
    use1 = iou1 > iou2                        # responsible-box selection
    rbox = jnp.where(use1, b1, b2)            # (Mp, 4)
    rconf = jnp.where(use1, c1, c2)           # (Mp, 1)
    riou = jnp.where(use1, iou1, iou2)        # (Mp, 1)

    coord = jnp.sum((rbox - tb) ** 2, axis=1, keepdims=True)      # (Mp, 1)
    conf = (rconf - riou) ** 2                                     # (Mp, 1)
    cls = jnp.sum((pcls - tcls) ** 2, axis=1, keepdims=True)       # (Mp, 1)
    noobj = c1 * c1 + c2 * c2                                      # (Mp, 1)

    per_cell = obj * (lambda_coord * coord + conf + cls) \
        + (1.0 - obj) * (lambda_noobj * noobj)

    out_ref[...] = jnp.sum(per_cell, axis=(0, 1), keepdims=True) * inv_batch


# ---------------------------------------------------------------------------
# Public wrapper (same semantics as the PyTorch Loss.forward)
# ---------------------------------------------------------------------------
def yolo_v1_loss(pred, gt, lambda_coord=5.0, lambda_noobj=0.5):
    """pred: (B, S, S, 30) array; gt: python list (len B) of lists of (x,y,w,h,cls)."""
    pred = jnp.asarray(pred, jnp.float32)
    B, S, S2, C = pred.shape
    assert S == S2 and C == NUM_CH, (pred.shape,)

    # ---- host-side gt parsing (ragged Python data, mirrors the reference loop) ----
    tgt = np.zeros((B, S, S, TGT_CH), np.float32)
    cell_size = 1.0 / S
    for ex_i, boxes in enumerate(gt):
        cells_with_obj = []
        for (x, y, w, h, class_index) in boxes:
            row, col = int(x // cell_size), int(y // cell_size)
            if (row, col) in cells_with_obj:
                continue
            cells_with_obj.append((row, col))
            # Replicates the reference exactly (x-offset uses col, y-offset uses row).
            t_x = x / cell_size - col
            t_y = y / cell_size - row
            t_w = w ** 0.5
            t_h = h ** 0.5
            tgt[ex_i, row, col, 0] = 1.0
            tgt[ex_i, row, col, 1:5] = (t_x, t_y, t_w, t_h)
            tgt[ex_i, row, col, 5 + int(class_index)] = 1.0

    M = B * S * S
    Mp = ((M + 7) // 8) * 8                   # pad rows to a sublane multiple;
    pred_flat = pred.reshape(M, C)            # zero rows contribute exactly 0 loss
    tgt_flat = jnp.asarray(tgt.reshape(M, TGT_CH))
    if Mp != M:
        pred_flat = jnp.pad(pred_flat, ((0, Mp - M), (0, 0)))
        tgt_flat = jnp.pad(tgt_flat, ((0, Mp - M), (0, 0)))

    kernel = functools.partial(_yolo_loss_kernel,
                               lambda_coord=float(lambda_coord),
                               lambda_noobj=float(lambda_noobj),
                               inv_batch=1.0 / B)
    out = pl.pallas_call(
        kernel,
        out_shape=jax.ShapeDtypeStruct((1, 1), jnp.float32),
    )(pred_flat, tgt_flat)
    return out[0, 0]


# ---------------------------------------------------------------------------
# Pure numpy reference (literal transcription of the PyTorch module) for self-check
# ---------------------------------------------------------------------------
def _iou_np(box1, box2):
    bx, by, bw, bh = [float(v) for v in box1]
    tx, ty, tw, th = [float(v) for v in box2]
    xl = max(bx - bw / 2, tx - tw / 2)
    xr = min(bx + bw / 2, tx + tw / 2)
    yt = max(by - bh / 2, ty - th / 2)
    yb = min(by + bh / 2, ty + th / 2)
    iw = max(xr - xl, 0.0)
    ih = max(yb - yt, 0.0)
    inter = iw * ih
    union = bw * bh + tw * th - inter
    return inter / (union + 1e-6)


def yolo_v1_loss_reference(pred, gt, lambda_coord=5.0, lambda_noobj=0.5):
    pred = np.asarray(pred, np.float64)
    B, S = pred.shape[0], pred.shape[1]
    cell_size = 1.0 / S
    loss = 0.0
    for ex_i in range(len(gt)):
        cells_with_obj = []
        for (x, y, w, h, class_index) in gt[ex_i]:
            row, col = int(x // cell_size), int(y // cell_size)
            if (row, col) in cells_with_obj:
                continue
            cells_with_obj.append((row, col))
            x = x / cell_size - col
            y = y / cell_size - row
            w = w ** 0.5
            h = h ** 0.5
            cp = pred[ex_i, row, col]
            iou1 = _iou_np(cp[:4], (x, y, w, h))
            iou2 = _iou_np(cp[5:9], (x, y, w, h))
            pb, pi = (cp[:5], iou1) if iou1 > iou2 else (cp[5:10], iou2)
            loss += lambda_coord * np.sum((pb[:4] - np.array([x, y, w, h])) ** 2)
            loss += (pb[4] - pi) ** 2
            onehot = np.zeros(NUM_CLASSES)
            onehot[int(class_index)] = 1.0
            loss += np.sum((cp[-NUM_CLASSES:] - onehot) ** 2)
        conf = pred[ex_i][..., [4, 9]].copy()
        if cells_with_obj:
            rows, cols = zip(*cells_with_obj)
            conf[rows, cols] = 0.0
        loss += lambda_noobj * np.sum(conf ** 2)
    return loss / len(gt)


# ---------------------------------------------------------------------------
if __name__ == "__main__":
    key = jax.random.PRNGKey(0)
    B, S = 2, 7                               # standard YOLOv1 grid, small batch
    pred = jax.random.uniform(key, (B, S, S, NUM_CH), jnp.float32)

    # Deterministic ground truth; third box of example 0 lands in the same cell as
    # the first one to exercise the de-duplication path of the reference loop.
    gt = [
        [(0.52, 0.35, 0.30, 0.40, 3),
         (0.10, 0.80, 0.20, 0.15, 7),
         (0.53, 0.36, 0.25, 0.33, 3)],
        [(0.91, 0.12, 0.10, 0.22, 11)],
    ]

    loss = yolo_v1_loss(pred, gt)
    loss = jax.block_until_ready(loss)

    ref = yolo_v1_loss_reference(np.asarray(pred), gt)
    assert np.isfinite(float(loss)), float(loss)
    assert abs(float(loss) - float(ref)) <= 2e-3 * max(1.0, abs(float(ref))), \
        (float(loss), float(ref))
    print("KERNEL_OK")
</pallas_src>

<mosaic_0001>
module attributes {stable_mosaic.version = 11 : i64} {
  func.func @_yolo_loss_kernel(%arg0: memref<104x30xf32, #tpu.memory_space<vmem>>, %arg1: memref<104x25xf32, #tpu.memory_space<vmem>>, %arg2: memref<1x1xf32, #tpu.memory_space<vmem>>) attributes {dimension_semantics = [], scalar_prefetch = 0 : i64, scratch_operands = 0 : i64, tpu.core_type = #tpu.core_type<tc>} {
    %c0 = arith.constant 0 : index
    %c0_0 = arith.constant 0 : index
    %0 = vector.load %arg0[%c0, %c0_0] : memref<104x30xf32, #tpu.memory_space<vmem>>, vector<104x30xf32>
    %c0_1 = arith.constant 0 : index
    %c0_2 = arith.constant 0 : index
    %1 = vector.load %arg1[%c0_1, %c0_2] : memref<104x25xf32, #tpu.memory_space<vmem>>, vector<104x25xf32>
    %2 = vector.extract_strided_slice %1 {offsets = [0, 0], sizes = [104, 1], strides = [1, 1]} : vector<104x25xf32> to vector<104x1xf32>
    %3 = vector.extract_strided_slice %1 {offsets = [0, 1], sizes = [104, 4], strides = [1, 1]} : vector<104x25xf32> to vector<104x4xf32>
    %4 = vector.extract_strided_slice %1 {offsets = [0, 5], sizes = [104, 20], strides = [1, 1]} : vector<104x25xf32> to vector<104x20xf32>
    %5 = vector.extract_strided_slice %0 {offsets = [0, 0], sizes = [104, 4], strides = [1, 1]} : vector<104x30xf32> to vector<104x4xf32>
    %6 = vector.extract_strided_slice %0 {offsets = [0, 4], sizes = [104, 1], strides = [1, 1]} : vector<104x30xf32> to vector<104x1xf32>
    %7 = vector.extract_strided_slice %0 {offsets = [0, 5], sizes = [104, 4], strides = [1, 1]} : vector<104x30xf32> to vector<104x4xf32>
    %8 = vector.extract_strided_slice %0 {offsets = [0, 9], sizes = [104, 1], strides = [1, 1]} : vector<104x30xf32> to vector<104x1xf32>
    %9 = vector.extract_strided_slice %0 {offsets = [0, 10], sizes = [104, 20], strides = [1, 1]} : vector<104x30xf32> to vector<104x20xf32>
    %10 = vector.extract_strided_slice %3 {offsets = [0, 0], sizes = [104, 1], strides = [1, 1]} : vector<104x4xf32> to vector<104x1xf32>
    %11 = vector.extract_strided_slice %3 {offsets = [0, 1], sizes = [104, 1], strides = [1, 1]} : vector<104x4xf32> to vector<104x1xf32>
    %12 = vector.extract_strided_slice %3 {offsets = [0, 2], sizes = [104, 1], strides = [1, 1]} : vector<104x4xf32> to vector<104x1xf32>
    %13 = vector.extract_strided_slice %3 {offsets = [0, 3], sizes = [104, 1], strides = [1, 1]} : vector<104x4xf32> to vector<104x1xf32>
    %14 = vector.extract_strided_slice %5 {offsets = [0, 0], sizes = [104, 1], strides = [1, 1]} : vector<104x4xf32> to vector<104x1xf32>
    %15 = vector.extract_strided_slice %5 {offsets = [0, 1], sizes = [104, 1], strides = [1, 1]} : vector<104x4xf32> to vector<104x1xf32>
    %16 = vector.extract_strided_slice %5 {offsets = [0, 2], sizes = [104, 1], strides = [1, 1]} : vector<104x4xf32> to vector<104x1xf32>
    %17 = vector.extract_strided_slice %5 {offsets = [0, 3], sizes = [104, 1], strides = [1, 1]} : vector<104x4xf32> to vector<104x1xf32>
    %cst = arith.constant 5.000000e-01 : f32
    %18 = vector.broadcast %cst : f32 to vector<104x1xf32>
    %19 = arith.mulf %18, %16 : vector<104x1xf32>
    %20 = arith.subf %14, %19 : vector<104x1xf32>
    %cst_3 = arith.constant 5.000000e-01 : f32
    %21 = vector.broadcast %cst_3 : f32 to vector<104x1xf32>
    %22 = arith.mulf %21, %12 : vector<104x1xf32>
    %23 = arith.subf %10, %22 : vector<104x1xf32>
    %24 = arith.maximumf %20, %23 : vector<104x1xf32>
    %cst_4 = arith.constant 5.000000e-01 : f32
    %25 = vector.broadcast %cst_4 : f32 to vector<104x1xf32>
    %26 = arith.mulf %25, %16 : vector<104x1xf32>
    %27 = arith.addf %14, %26 : vector<104x1xf32>
    %cst_5 = arith.constant 5.000000e-01 : f32
    %28 = vector.broadcast %cst_5 : f32 to vector<104x1xf32>
    %29 = arith.mulf %28, %12 : vector<104x1xf32>
    %30 = arith.addf %10, %29 : vector<104x1xf32>
    %31 = arith.minimumf %27, %30 : vector<104x1xf32>
    %cst_6 = arith.constant 5.000000e-01 : f32
    %32 = vector.broadcast %cst_6 : f32 to vector<104x1xf32>
    %33 = arith.mulf %32, %17 : vector<104x1xf32>
    %34 = arith.subf %15, %33 : vector<104x1xf32>
    %cst_7 = arith.constant 5.000000e-01 : f32
    %35 = vector.broadcast %cst_7 : f32 to vector<104x1xf32>
    %36 = arith.mulf %35, %13 : vector<104x1xf32>
    %37 = arith.subf %11, %36 : vector<104x1xf32>
    %38 = arith.maximumf %34, %37 : vector<104x1xf32>
    %cst_8 = arith.constant 5.000000e-01 : f32
    %39 = vector.broadcast %cst_8 : f32 to vector<104x1xf32>
    %40 = arith.mulf %39, %17 : vector<104x1xf32>
    %41 = arith.addf %15, %40 : vector<104x1xf32>
    %cst_9 = arith.constant 5.000000e-01 : f32
    %42 = vector.broadcast %cst_9 : f32 to vector<104x1xf32>
    %43 = arith.mulf %42, %13 : vector<104x1xf32>
    %44 = arith.addf %11, %43 : vector<104x1xf32>
    %45 = arith.minimumf %41, %44 : vector<104x1xf32>
    %46 = arith.subf %31, %24 : vector<104x1xf32>
    %cst_10 = arith.constant 0.000000e+00 : f32
    %47 = vector.broadcast %cst_10 : f32 to vector<104x1xf32>
    %48 = arith.maximumf %46, %47 : vector<104x1xf32>
    %49 = arith.subf %45, %38 : vector<104x1xf32>
    %cst_11 = arith.constant 0.000000e+00 : f32
    %50 = vector.broadcast %cst_11 : f32 to vector<104x1xf32>
    %51 = arith.maximumf %49, %50 : vector<104x1xf32>
    %52 = arith.mulf %48, %51 : vector<104x1xf32>
    %53 = arith.mulf %16, %17 : vector<104x1xf32>
    %54 = arith.mulf %12, %13 : vector<104x1xf32>
    %55 = arith.addf %53, %54 : vector<104x1xf32>
    %56 = arith.subf %55, %52 : vector<104x1xf32>
    %cst_12 = arith.constant 9.99999997E-7 : f32
    %57 = vector.broadcast %cst_12 : f32 to vector<104x1xf32>
    %58 = arith.addf %56, %57 : vector<104x1xf32>
    %59 = arith.divf %52, %58 : vector<104x1xf32>
    %60 = vector.extract_strided_slice %7 {offsets = [0, 0], sizes = [104, 1], strides = [1, 1]} : vector<104x4xf32> to vector<104x1xf32>
    %61 = vector.extract_strided_slice %7 {offsets = [0, 1], sizes = [104, 1], strides = [1, 1]} : vector<104x4xf32> to vector<104x1xf32>
    %62 = vector.extract_strided_slice %7 {offsets = [0, 2], sizes = [104, 1], strides = [1, 1]} : vector<104x4xf32> to vector<104x1xf32>
    %63 = vector.extract_strided_slice %7 {offsets = [0, 3], sizes = [104, 1], strides = [1, 1]} : vector<104x4xf32> to vector<104x1xf32>
    %cst_13 = arith.constant 5.000000e-01 : f32
    %64 = vector.broadcast %cst_13 : f32 to vector<104x1xf32>
    %65 = arith.mulf %64, %62 : vector<104x1xf32>
    %66 = arith.subf %60, %65 : vector<104x1xf32>
    %cst_14 = arith.constant 5.000000e-01 : f32
    %67 = vector.broadcast %cst_14 : f32 to vector<104x1xf32>
    %68 = arith.mulf %67, %12 : vector<104x1xf32>
    %69 = arith.subf %10, %68 : vector<104x1xf32>
    %70 = arith.maximumf %66, %69 : vector<104x1xf32>
    %cst_15 = arith.constant 5.000000e-01 : f32
    %71 = vector.broadcast %cst_15 : f32 to vector<104x1xf32>
    %72 = arith.mulf %71, %62 : vector<104x1xf32>
    %73 = arith.addf %60, %72 : vector<104x1xf32>
    %cst_16 = arith.constant 5.000000e-01 : f32
    %74 = vector.broadcast %cst_16 : f32 to vector<104x1xf32>
    %75 = arith.mulf %74, %12 : vector<104x1xf32>
    %76 = arith.addf %10, %75 : vector<104x1xf32>
    %77 = arith.minimumf %73, %76 : vector<104x1xf32>
    %cst_17 = arith.constant 5.000000e-01 : f32
    %78 = vector.broadcast %cst_17 : f32 to vector<104x1xf32>
    %79 = arith.mulf %78, %63 : vector<104x1xf32>
    %80 = arith.subf %61, %79 : vector<104x1xf32>
    %cst_18 = arith.constant 5.000000e-01 : f32
    %81 = vector.broadcast %cst_18 : f32 to vector<104x1xf32>
    %82 = arith.mulf %81, %13 : vector<104x1xf32>
    %83 = arith.subf %11, %82 : vector<104x1xf32>
    %84 = arith.maximumf %80, %83 : vector<104x1xf32>
    %cst_19 = arith.constant 5.000000e-01 : f32
    %85 = vector.broadcast %cst_19 : f32 to vector<104x1xf32>
    %86 = arith.mulf %85, %63 : vector<104x1xf32>
    %87 = arith.addf %61, %86 : vector<104x1xf32>
    %cst_20 = arith.constant 5.000000e-01 : f32
    %88 = vector.broadcast %cst_20 : f32 to vector<104x1xf32>
    %89 = arith.mulf %88, %13 : vector<104x1xf32>
    %90 = arith.addf %11, %89 : vector<104x1xf32>
    %91 = arith.minimumf %87, %90 : vector<104x1xf32>
    %92 = arith.subf %77, %70 : vector<104x1xf32>
    %cst_21 = arith.constant 0.000000e+00 : f32
    %93 = vector.broadcast %cst_21 : f32 to vector<104x1xf32>
    %94 = arith.maximumf %92, %93 : vector<104x1xf32>
    %95 = arith.subf %91, %84 : vector<104x1xf32>
    %cst_22 = arith.constant 0.000000e+00 : f32
    %96 = vector.broadcast %cst_22 : f32 to vector<104x1xf32>
    %97 = arith.maximumf %95, %96 : vector<104x1xf32>
    %98 = arith.mulf %94, %97 : vector<104x1xf32>
    %99 = arith.mulf %62, %63 : vector<104x1xf32>
    %100 = arith.mulf %12, %13 : vector<104x1xf32>
    %101 = arith.addf %99, %100 : vector<104x1xf32>
    %102 = arith.subf %101, %98 : vector<104x1xf32>
    %cst_23 = arith.constant 9.99999997E-7 : f32
    %103 = vector.broadcast %cst_23 : f32 to vector<104x1xf32>
    %104 = arith.addf %102, %103 : vector<104x1xf32>
    %105 = arith.divf %98, %104 : vector<104x1xf32>
    %106 = arith.cmpf ogt, %59, %105 : vector<104x1xf32>
    %107 = vector.shape_cast %106 : vector<104x1xi1> to vector<104x1xi1>
    %108 = vector.broadcast %107 : vector<104x1xi1> to vector<104x4xi1>
    %109 = arith.select %108, %5, %7 : vector<104x4xi1>, vector<104x4xf32>
    %110 = arith.select %106, %6, %8 : vector<104x1xi1>, vector<104x1xf32>
    %111 = arith.select %106, %59, %105 : vector<104x1xi1>, vector<104x1xf32>
    %112 = arith.subf %109, %3 : vector<104x4xf32>
    %113 = arith.mulf %112, %112 : vector<104x4xf32>
    %cst_24 = arith.constant dense<0.000000e+00> : vector<104xf32>
    %114 = vector.multi_reduction <add>, %113, %cst_24 [1] : vector<104x4xf32> to vector<104xf32>
    %115 = vector.shape_cast %114 : vector<104xf32> to vector<104x1xf32>
    %116 = arith.subf %110, %111 : vector<104x1xf32>
    %117 = arith.mulf %116, %116 : vector<104x1xf32>
    %118 = arith.subf %9, %4 : vector<104x20xf32>
    %119 = arith.mulf %118, %118 : vector<104x20xf32>
    %cst_25 = arith.constant dense<0.000000e+00> : vector<104xf32>
    %120 = vector.multi_reduction <add>, %119, %cst_25 [1] : vector<104x20xf32> to vector<104xf32>
    %121 = vector.shape_cast %120 : vector<104xf32> to vector<104x1xf32>
    %122 = arith.mulf %6, %6 : vector<104x1xf32>
    %123 = arith.mulf %8, %8 : vector<104x1xf32>
    %124 = arith.addf %122, %123 : vector<104x1xf32>
    %cst_26 = arith.constant 5.000000e+00 : f32
    %125 = vector.broadcast %cst_26 : f32 to vector<104x1xf32>
    %126 = arith.mulf %125, %115 : vector<104x1xf32>
    %127 = arith.addf %126, %117 : vector<104x1xf32>
    %128 = arith.addf %127, %121 : vector<104x1xf32>
    %129 = arith.mulf %2, %128 : vector<104x1xf32>
    %cst_27 = arith.constant 1.000000e+00 : f32
    %130 = vector.broadcast %cst_27 : f32 to vector<104x1xf32>
    %131 = arith.subf %130, %2 : vector<104x1xf32>
    %cst_28 = arith.constant 5.000000e-01 : f32
    %132 = vector.broadcast %cst_28 : f32 to vector<104x1xf32>
    %133 = arith.mulf %132, %124 : vector<104x1xf32>
    %134 = arith.mulf %131, %133 : vector<104x1xf32>
    %135 = arith.addf %129, %134 : vector<104x1xf32>
    %136 = vector.shape_cast %135 : vector<104x1xf32> to vector<1x104x1xf32>
    %cst_29 = arith.constant dense<0.000000e+00> : vector<1xf32>
    %137 = vector.multi_reduction <add>, %136, %cst_29 [1, 2] : vector<1x104x1xf32> to vector<1xf32>
    %138 = vector.shape_cast %137 : vector<1xf32> to vector<1x1x1xf32>
    %139 = vector.extract %138[0, 0, 0] : f32 from vector<1x1x1xf32>
    %140 = vector.broadcast %139 : f32 to vector<1x1xf32>
    %cst_30 = arith.constant 5.000000e-01 : f32
    %141 = vector.broadcast %cst_30 : f32 to vector<1x1xf32>
    %142 = arith.mulf %140, %141 : vector<1x1xf32>
    %c0_31 = arith.constant 0 : index
    %c0_32 = arith.constant 0 : index
    %143 = vector.load %arg2[%c0_31, %c0_32] : memref<1x1xf32, #tpu.memory_space<vmem>>, vector<1x1xf32>
    tpu.vector_store %arg2[%c0_31, %c0_32], %142 {strides = array<i32>} : memref<1x1xf32, #tpu.memory_space<vmem>>, vector<1x1xf32>,
    return
  }
}

</mosaic_0001>

<bundles_post_ra>
// kernel: tpu_custom_call.1
= control target key start
LH: loop header
LB: loop body
LE: loop exit
PB: predicated region body
PF: predicated region fallthrough
CT: control target
= control target key end

     0   :  { %s2152_s17 = smov 126   ;;  %s4344_s0 = inlined_call_operand.vmem [shape: f32[104,30], index: 0, kind: input, shape index: {}]   ;;  %s4345_s1 = inlined_call_operand.vmem [shape: f32[104,25], index: 1, kind: input, shape index: {}]   ;;  %s4346_s2 = inlined_call_operand.hbm [shape: f32[1,1], index: 2, kind: output, shape index: {}]  }
   0x1   :  { %v2181_v0 = vld [vmem:[%s4344_s0 + $0x10] sm:$0xff]  ;;  %v2186_v1 = vld [vmem:[%s4344_s0] sm:$0xff]  ;;  %v2191_v2 = vld [vmem:[%s4344_s0 + $0x18] sm:$0xff] }
   0x2   :  { %v40_v3 = vmul.f32 0.5, %v2181_v0  ;;  %v38_v4 = vmul.f32 0.5, %v2186_v1  ;;  %v2198_v5 = vld [vmem:[%s4344_s0 + $0x8] sm:$0xff]  ;;  %v41_v6 = vmul.f32 0.5, %v2191_v2  ;;  %v2212_v9 = vld [vmem:[%s4344_s0 + $0x20] sm:$0xff]  ;;  %v2221_v12 = vld [vmem:[%s4344_s0 + $0x38] sm:$0xff] }
   0x3   :  { %v39_v7 = vmul.f32 0.5, %v2198_v5  ;;  %v2207_v8 = vld [vmem:[%s4344_s0 + $0x28] sm:$0xff]  ;;  %v42_v11 = vmul.f32 0.5, %v2212_v9  ;;  %v2226_v13 = vld [vmem:[%s4344_s0 + $0x30] sm:$0xff] }
   0x4   :  { %68 = vrot.lane.b32.xlu1 %v40_v3, %s2152_s17  ;;  %64 = vrot.lane.b32.xlu0 %v38_v4, %s2152_s17  ;;  %v43_v10 = vmul.f32 0.5, %v2207_v8 }
   0x8   :  { %70 = vrot.lane.b32.xlu1 %v41_v6, %s2152_s17  ;;  %66 = vrot.lane.b32.xlu0 %v39_v7, %s2152_s17 }
   0x9   :  { %7 = vsyncpa [#allocation3], 0  ;;  %v45_v14 = vmul.f32 0.5, %v2221_v12  ;;  %v44_v15 = vmul.f32 0.5, %v2226_v13  ;;  %v2235_v16 = vld [vmem:[%s4344_s0 + $0x48] sm:$0xff]  ;;  %v2240_v17 = vld [vmem:[%s4344_s0 + $0x40] sm:$0xff] }
   0xa   :  { %4439 = vst [vmem:[#allocation5_spill] sm:$0xff] %v2235_v16  ;;  %4440 = vst [vmem:[#allocation6_spill] sm:$0xff] %v2240_v17  ;;  %v47_v18 = vmul.f32 0.5, %v2235_v16  ;;  %v46_v19 = vmul.f32 0.5, %v2240_v17  ;;  %v2249_v20 = vld [vmem:[%s4344_s0 + $0x58] sm:$0xff]  ;;  %v2254_v21 = vld [vmem:[%s4344_s0 + $0x50] sm:$0xff] }
   0xb   :  { %v49_v22 = vmul.f32 0.5, %v2249_v20  ;;  %v48_v23 = vmul.f32 0.5, %v2254_v21  ;;  %v2263_v24 = vld [vmem:[%s4345_s1] sm:$0xff]  ;;  %v2277_v28 = vld [vmem:[%s4345_s1 + $0x10] sm:$0xff]  ;;  %v2282_v29 = vld [vmem:[%s4345_s1 + $0x8] sm:$0xff]  ;;  %s2153_s7 = smov 127  }
   0xc   :  { %74 = vrot.lane.b32.xlu1 %v43_v10, %s2152_s17  ;;  %72 = vrot.lane.b32.xlu0 %v42_v11, %s2152_s17  ;;  %v2268_v25 = vld [vmem:[%s4344_s0 + $0x60] sm:$0xff]  ;;  %v116_v26 = vmul.f32 0.5, %v2263_v24  ;;  %v118_v30 = vmul.f32 0.5, %v2277_v28  ;;  %v117_v31 = vmul.f32 0.5, %v2282_v29  ;;  %v2296_v33 = vld [vmem:[%s4345_s1 + $0x18] sm:$0xff]  ;;  %s2154_s8 = smov 4  }
   0xd   :  { %v50_v27 = vmul.f32 0.5, %v2268_v25  ;;  %v2291_v32 = vld [vmem:[%s4345_s1 + $0x20] sm:$0xff]  ;;  %v119_v35 = vmul.f32 0.5, %v2296_v33  ;;  %v2305_v36 = vld [vmem:[%s4345_s1 + $0x30] sm:$0xff]  ;;  %v2310_v37 = vld [vmem:[%s4345_s1 + $0x28] sm:$0xff]  ;;  %s2155_s9 = smov 2  }
   0xe   :  { %v120_v34 = vmul.f32 0.5, %v2291_v32  ;;  %v122_v38 = vmul.f32 0.5, %v2305_v36  ;;  %v121_v39 = vmul.f32 0.5, %v2310_v37  ;;  %v2319_v40 = vld [vmem:[%s4345_s1 + $0x40] sm:$0xff]  ;;  %v2324_v41 = vld [vmem:[%s4345_s1 + $0x38] sm:$0xff]  ;;  %v2333_v44 = vld [vmem:[%s4345_s1 + $0x50] sm:$0xff] }
   0xf   :  { %v124_v42 = vmul.f32 0.5, %v2319_v40  ;;  %v123_v43 = vmul.f32 0.5, %v2324_v41  ;;  %v2338_v45 = vld [vmem:[%s4345_s1 + $0x48] sm:$0xff]  ;;  %v126_v46 = vmul.f32 0.5, %v2333_v44  ;;  %v2347_v48 = vld [vmem:[%s4345_s1 + $0x60] sm:$0xff]  ;;  %v2352_v49 = vld [vmem:[%s4345_s1 + $0x58] sm:$0xff] }
  0x10   :  { %78 = vrot.lane.b32.xlu1 %v45_v14, %s2152_s17  ;;  %76 = vrot.lane.b32.xlu0 %v44_v15, %s2152_s17  ;;  %v125_v47 = vmul.f32 0.5, %v2338_v45  ;;  %v128_v50 = vmul.f32 0.5, %v2347_v48  ;;  %v127_v51 = vmul.f32 0.5, %v2352_v49  ;;  %s2156_s10 = smov 5   ;;  %s2157_s13 = smov 123   ;;  %vm1690_vm0 = vcmask 162816  }
  0x11   :  { %s2160_s24 = smov 119   ;;  %vm1507_vm15 = vcmask 31744  }
  0x14   :  { %82 = vrot.lane.b32.xlu1 %v47_v18, %s2152_s17  ;;  %80 = vrot.lane.b32.xlu0 %v46_v19, %s2152_s17 }
  0x18   :  { %86 = vrot.lane.b32.xlu1 %v49_v22, %s2152_s17  ;;  %84 = vrot.lane.b32.xlu0 %v48_v23, %s2152_s17 }
  0x1c   :  { %142 = vrot.lane.b32.xlu1 %v116_v26, %s2152_s17  ;;  %88 = vrot.lane.b32.xlu0 %v50_v27, %s2152_s17 }
  0x20   :  { %146 = vrot.lane.b32.xlu1 %v118_v30, %s2152_s17  ;;  %144 = vrot.lane.b32.xlu0 %v117_v31, %s2152_s17 }
  0x24   :  { %150 = vrot.lane.b32.xlu1 %v120_v34, %s2152_s17  ;;  %148 = vrot.lane.b32.xlu0 %v119_v35, %s2152_s17 }
  0x28   :  { %154 = vrot.lane.b32.xlu1 %v122_v38, %s2152_s17  ;;  %152 = vrot.lane.b32.xlu0 %v121_v39, %s2152_s17 }
  0x2c   :  { %158 = vrot.lane.b32.xlu1 %v124_v42, %s2152_s17  ;;  %156 = vrot.lane.b32.xlu0 %v123_v43, %s2152_s17 }
  0x30   :  { %162 = vrot.lane.b32.xlu1 %v126_v46, %s2152_s17  ;;  %160 = vrot.lane.b32.xlu0 %v125_v47, %s2152_s17 }
  0x34   :  { %166 = vrot.lane.b32.xlu1 %v128_v50, %s2152_s17  ;;  %164 = vrot.lane.b32.xlu0 %v127_v51, %s2152_s17 }
  0x38   :  { %456 = vrot.lane.b32.xlu0 %v2198_v5, %s2153_s7  ;;  %454 = vrot.lane.b32.xlu1 %v2186_v1, %s2153_s7 }
  0x3c   :  { %460 = vrot.lane.b32.xlu0 %v2191_v2, %s2153_s7  ;;  %458 = vrot.lane.b32.xlu1 %v2181_v0, %s2153_s7 }
  0x40   :  { %464 = vrot.lane.b32.xlu0 %v2207_v8, %s2153_s7  ;;  %462 = vrot.lane.b32.xlu1 %v2212_v9, %s2153_s7 }
  0x44   :  { %468 = vrot.lane.b32.xlu0 %v2221_v12, %s2153_s7  ;;  %466 = vrot.lane.b32.xlu1 %v2226_v13, %s2153_s7 }
  0x48   :  { %472 = vrot.lane.b32.xlu0 %v2235_v16, %s2153_s7  ;;  %470 = vrot.lane.b32.xlu1 %v2240_v17, %s2153_s7 }
  0x76   :  { %v2380_v52 = vpop.permute.xlu1 %68  ;;  %v2382_v53 = vpop.permute.xlu0 %64 }
  0x7a   :  { %v2384_v54 = vpop.permute.xlu1 %70  ;;  %v2386_v55 = vpop.permute.xlu0 %66 }
  0x7e   :  { %v2388_v56 = vpop.permute.xlu1 %74  ;;  %v2390_v57 = vpop.permute.xlu0 %72 }
  0x82   :  { %v2392_v58 = vpop.permute.xlu1 %78  ;;  %v2394_v59 = vpop.permute.xlu0 %76 }
  0x86   :  { %v2396_v60 = vpop.permute.xlu1 %82  ;;  %v2398_v61 = vpop.permute.xlu0 %80 }
  0x87   :  { %4441 = vst [vmem:[#allocation7_spill] sm:$0xff] %v2396_v60  ;;  %4442 = vst [vmem:[#allocation8_spill] sm:$0xff] %v2398_v61 }
  0x8a   :  { %v2400_v62 = vpop.permute.xlu1 %86  ;;  %v2402_v63 = vpop.permute.xlu0 %84 }
  0x8b   :  { %4443 = vst [vmem:[#allocation9_spill] sm:$0xff] %v2400_v62  ;;  %4444 = vst [vmem:[#allocation10_spill] sm:$0xff] %v2402_v63 }
  0x8e   :  { %v143_v3 = vpop.permute.xlu1 %142  ;;  %v2404_v4 = vpop.permute.xlu0 %88 }
  0x8f   :  { %4445 = vst [vmem:[#allocation11_spill] sm:$0xff] %v2404_v4  ;;  %v2407_v6 = vsub.f32 %v2263_v24, %v143_v3  ;;  %v272_v63 = vadd.f32 %v143_v3, %v2263_v24 }
  0x91   :  { %207 = vrot.lane.b32.xlu0 %v2407_v6, %s2153_s7 }
  0x92   :  { %v147_v7 = vpop.permute.xlu1 %146  ;;  %v145_v10 = vpop.permute.xlu0 %144 }
  0x93   :  { %v2412_v11 = vsub.f32 %v2277_v28, %v147_v7  ;;  %v2415_v14 = vsub.f32 %v2282_v29, %v145_v10  ;;  %v273_v62 = vadd.f32 %v145_v10, %v2282_v29  ;;  %v274_v17 = vadd.f32 %v147_v7, %v2277_v28 }
  0x95   :  { %211 = vrot.lane.b32.xlu0 %v2412_v11, %s2153_s7  ;;  %209 = vrot.lane.b32.xlu1 %v2415_v14, %s2153_s7 }
  0x96   :  { %v151_v15 = vpop.permute.xlu1 %150  ;;  %v149_v18 = vpop.permute.xlu0 %148 }
  0x97   :  { %v2422_v19 = vsub.f32 %v2291_v32, %v151_v15  ;;  %v184_v22 = vsub.f32 %v2296_v33, %v149_v18  ;;  %v275_v61 = vadd.f32 %v149_v18, %v2296_v33  ;;  %v276_v16 = vadd.f32 %v151_v15, %v2291_v32 }
  0x99   :  { %215 = vrot.lane.b32.xlu0 %v2422_v19, %s2153_s7  ;;  %213 = vrot.lane.b32.xlu1 %v184_v22, %s2153_s7 }
  0x9a   :  { %v155_v23 = vpop.permute.xlu1 %154  ;;  %v153_v26 = vpop.permute.xlu0 %152 }
  0x9b   :  { %v187_v27 = vsub.f32 %v2305_v36, %v155_v23  ;;  %v186_v30 = vsub.f32 %v2310_v37, %v153_v26  ;;  %v277_v60 = vadd.f32 %v153_v26, %v2310_v37  ;;  %v278_v3 = vadd.f32 %v155_v23, %v2305_v36 }
  0x9d   :  { %219 = vrot.lane.b32.xlu0 %v187_v27, %s2153_s7  ;;  %217 = vrot.lane.b32.xlu1 %v186_v30, %s2153_s7 }
  0x9e   :  { %v159_v31 = vpop.permute.xlu1 %158  ;;  %v157_v34 = vpop.permute.xlu0 %156 }
  0x9f   :  { %v189_v35 = vsub.f32 %v2319_v40, %v159_v31  ;;  %v188_v38 = vsub.f32 %v2324_v41, %v157_v34  ;;  %v279_v10 = vadd.f32 %v157_v34, %v2324_v41  ;;  %v280_v7 = vadd.f32 %v159_v31, %v2319_v40 }
  0xa1   :  { %223 = vrot.lane.b32.xlu0 %v189_v35, %s2153_s7  ;;  %221 = vrot.lane.b32.xlu1 %v188_v38, %s2153_s7 }
  0xa2   :  { %v163_v39 = vpop.permute.xlu1 %162  ;;  %v161_v42 = vpop.permute.xlu0 %160 }
  0xa3   :  { %v191_v43 = vsub.f32 %v2333_v44, %v163_v39  ;;  %v190_v46 = vsub.f32 %v2338_v45, %v161_v42  ;;  %v281_v18 = vadd.f32 %v161_v42, %v2338_v45  ;;  %v282_v15 = vadd.f32 %v163_v39, %v2333_v44 }
  0xa5   :  { %227 = vrot.lane.b32.xlu0 %v191_v43, %s2153_s7  ;;  %225 = vrot.lane.b32.xlu1 %v190_v46, %s2153_s7 }
  0xa6   :  { %v167_v47 = vpop.permute.xlu1 %166  ;;  %v165_v50 = vpop.permute.xlu0 %164 }
  0xa7   :  { %v193_v51 = vsub.f32 %v2347_v48, %v167_v47  ;;  %v192_v4 = vsub.f32 %v2352_v49, %v165_v50  ;;  %v283_v26 = vadd.f32 %v165_v50, %v2352_v49  ;;  %v284_v23 = vadd.f32 %v167_v47, %v2347_v48 }
  0xa8   :  { %v2562_v50 = vsub.f32 %v2186_v1, %v2382_v53 }
  0xa9   :  { %231 = vrot.lane.b32.xlu0 %v193_v51, %s2153_s7  ;;  %229 = vrot.lane.b32.xlu1 %v192_v4, %s2153_s7 }
  0xad   :  { %300 = vrot.lane.b32.xlu0 %v273_v62, %s2153_s7  ;;  %298 = vrot.lane.b32.xlu1 %v272_v63, %s2153_s7 }
  0xb1   :  { %304 = vrot.lane.b32.xlu0 %v275_v61, %s2153_s7  ;;  %302 = vrot.lane.b32.xlu1 %v274_v17, %s2153_s7 }
  0xb5   :  { %308 = vrot.lane.b32.xlu0 %v277_v60, %s2153_s7  ;;  %306 = vrot.lane.b32.xlu1 %v276_v16, %s2153_s7 }
  0xb9   :  { %312 = vrot.lane.b32.xlu0 %v279_v10, %s2153_s7  ;;  %310 = vrot.lane.b32.xlu1 %v278_v3, %s2153_s7 }
  0xbd   :  { %316 = vrot.lane.b32.xlu0 %v281_v18, %s2153_s7  ;;  %314 = vrot.lane.b32.xlu1 %v280_v7, %s2153_s7 }
  0xc1   :  { %320 = vrot.lane.b32.xlu0 %v283_v26, %s2153_s7  ;;  %318 = vrot.lane.b32.xlu1 %v282_v15, %s2153_s7 }
  0xc5   :  { %476 = vrot.lane.b32.xlu0 %v2249_v20, %s2153_s7  ;;  %322 = vrot.lane.b32.xlu1 %v284_v23, %s2153_s7 }
  0xc9   :  { %792 = vrot.lane.b32.xlu0 %v2407_v6, %s2154_s8  ;;  %474 = vrot.lane.b32.xlu1 %v2254_v21, %s2153_s7 }
  0xcd   :  { %844 = vrot.lane.b32.xlu0 %v272_v63, %s2154_s8  ;;  %478 = vrot.lane.b32.xlu1 %v2268_v25, %s2153_s7  ;;  %v2494_v63 = vpop.permute.xlu0 %456 }
  0xce   :  { %4446 = vst [vmem:[#allocation12_spill] sm:$0xff] %v2494_v63 }
  0xd1   :  { %796 = vrot.lane.b32.xlu0 %v2412_v11, %s2154_s8  ;;  %794 = vrot.lane.b32.xlu1 %v2415_v14, %s2154_s8 }
  0xd5   :  { %798 = vrot.lane.b32.xlu0 %v184_v22, %s2154_s8  ;;  %846 = vrot.lane.b32.xlu1 %v273_v62, %s2154_s8  ;;  %v2498_v62 = vpop.permute.xlu1 %454 }
  0xd6   :  { %4447 = vst [vmem:[#allocation13_spill] sm:$0xff] %v2498_v62 }
  0xd9   :  { %800 = vrot.lane.b32.xlu0 %v2422_v19, %s2154_s8  ;;  %848 = vrot.lane.b32.xlu1 %v274_v17, %s2154_s8  ;;  %v2500_v17 = vpop.permute.xlu0 %460 }
  0xda   :  { %4448 = vst [vmem:[#allocation14_spill] sm:$0xff] %v2500_v17 }
  0xdd   :  { %802 = vrot.lane.b32.xlu0 %v186_v30, %s2154_s8  ;;  %850 = vrot.lane.b32.xlu1 %v275_v61, %s2154_s8  ;;  %v2504_v61 = vpop.permute.xlu1 %458 }
  0xde   :  { %4449 = vst [vmem:[#allocation15_spill] sm:$0xff] %v2504_v61 }
  0xe1   :  { %804 = vrot.lane.b32.xlu0 %v187_v27, %s2154_s8  ;;  %852 = vrot.lane.b32.xlu1 %v276_v16, %s2154_s8  ;;  %v2508_v16 = vpop.permute.xlu0 %464 }
  0xe2   :  { %4450 = vst [vmem:[#allocation16_spill] sm:$0xff] %v2508_v16 }
  0xe5   :  { %806 = vrot.lane.b32.xlu0 %v188_v38, %s2154_s8  ;;  %854 = vrot.lane.b32.xlu1 %v277_v60, %s2154_s8  ;;  %v2512_v60 = vpop.permute.xlu1 %462  ;;  %v2514_v6 = vpop.permute.xlu0 %468 }
  0xe6   :  { %4451 = vst [vmem:[#allocation17_spill] sm:$0xff] %v2512_v60  ;;  %4452 = vst [vmem:[#allocation18_spill] sm:$0xff] %v2514_v6 }
  0xe9   :  { %808 = vrot.lane.b32.xlu0 %v189_v35, %s2154_s8  ;;  %856 = vrot.lane.b32.xlu1 %v278_v3, %s2154_s8  ;;  %v2518_v11 = vpop.permute.xlu1 %466  ;;  %v2521_v14 = vpop.permute.xlu0 %472  ;;  %v2570_v3 = vsub.f32 %v2198_v5, %v2386_v55 }
  0xea   :  { %4453 = vst [vmem:[#allocation19_spill] sm:$0xff] %v2518_v11  ;;  %4454 = vst [vmem:[#allocation20_spill] sm:$0xff] %v2521_v14 }
  0xed   :  { %810 = vrot.lane.b32.xlu0 %v190_v46, %s2154_s8  ;;  %858 = vrot.lane.b32.xlu1 %v279_v10, %s2154_s8  ;;  %v2574_v10 = vadd.f32 %v2386_v55, %v2198_v5  ;;  %v2590_v5 = vadd.f32 %v2380_v52, %v2181_v0  ;;  %v2594_v55 = vadd.f32 %v2384_v54, %v2191_v2 }
  0xf1   :  { %812 = vrot.lane.b32.xlu0 %v191_v43, %s2154_s8  ;;  %860 = vrot.lane.b32.xlu1 %v280_v7, %s2154_s8 }
  0xf5   :  { %814 = vrot.lane.b32.xlu0 %v192_v4, %s2154_s8  ;;  %862 = vrot.lane.b32.xlu1 %v281_v18, %s2154_s8  ;;  %v2526_v4 = vpop.permute.xlu1 %470 }
  0xf6   :  { %4455 = vst [vmem:[#allocation21_spill] sm:$0xff] %v2526_v4 }
  0xf9   :  { %816 = vrot.lane.b32.xlu0 %v193_v51, %s2154_s8  ;;  %864 = vrot.lane.b32.xlu1 %v282_v15, %s2154_s8  ;;  %v2566_v51 = vadd.f32 %v2382_v53, %v2186_v1  ;;  %v2582_v1 = vsub.f32 %v2181_v0, %v2380_v52  ;;  %v2586_v53 = vsub.f32 %v2191_v2, %v2384_v54 }
  0xfa   :  { %v2608_v2 = vsub.f32 %v2207_v8, %v2388_v56  ;;  %v2612_v54 = vadd.f32 %v2388_v56, %v2207_v8 }
  0xfd   :  { %866 = vrot.lane.b32.xlu1 %v283_v26, %s2154_s8  ;;  %519 = vrot.lane.b32.xlu0 %v2263_v24, %s2153_s7 }
 0x101   :  { %868 = vrot.lane.b32.xlu1 %v284_v23, %s2154_s8  ;;  %523 = vrot.lane.b32.xlu0 %v2277_v28, %s2153_s7 }
 0x103   :  { %v208_v19 = vpop.permute.xlu0 %207 }
 0x104   :  { %v246_v15 = vmax.f32 %v2562_v50, %v208_v19 }
 0x105   :  { %521 = vrot.lane.b32.xlu1 %v2282_v29, %s2153_s7  ;;  %527 = vrot.lane.b32.xlu0 %v2291_v32, %s2153_s7 }
 0x107   :  { %v210_v22 = vpop.permute.xlu1 %209  ;;  %v212_v27 = vpop.permute.xlu0 %211 }
 0x108   :  { %v247_v26 = vmax.f32 %v2570_v3, %v210_v22 }
 0x109   :  { %525 = vrot.lane.b32.xlu1 %v2296_v33, %s2153_s7 }
 0x10b   :  { %v214_v30 = vpop.permute.xlu1 %213  ;;  %v216_v31 = vpop.permute.xlu0 %215 }
 0x10d   :  { %529 = vrot.lane.b32.xlu1 %v2310_v37, %s2153_s7 }
 0x10f   :  { %v218_v34 = vpop.permute.xlu1 %217  ;;  %v2538_v35 = vpop.permute.xlu0 %219 }
 0x110   :  { %v251_v56 = vmax.f32 %v2608_v2, %v218_v34  ;;  %v2652_v34 = vadd.f32 %v2394_v59, %v2226_v13 }
 0x111   :  { %531 = vrot.lane.b32.xlu1 %v2305_v36, %s2153_s7 }
 0x113   :  { %v2542_v38 = vpop.permute.xlu1 %221  ;;  %v2544_v39 = vpop.permute.xlu0 %223 }
 0x115   :  { %533 = vrot.lane.b32.xlu1 %v2324_v41, %s2153_s7 }
 0x117   :  { %v2548_v42 = vpop.permute.xlu1 %225  ;;  %v2550_v43 = vpop.permute.xlu0 %227 }
 0x119   :  { %535 = vrot.lane.b32.xlu1 %v2319_v40, %s2153_s7 }
 0x11b   :  { %v2554_v46 = vpop.permute.xlu1 %229  ;;  %v2556_v47 = vpop.permute.xlu0 %231 }
 0x11d   :  { %537 = vrot.lane.b32.xlu1 %v2338_v45, %s2153_s7 }
 0x11f   :  { %v299_v7 = vpop.permute.xlu1 %298  ;;  %v301_v18 = vpop.permute.xlu0 %300 }
 0x120   :  { %v337_v23 = vmin.f32 %v2566_v51, %v299_v7  ;;  %v338_v62 = vmin.f32 %v2574_v10, %v301_v18  ;;  %v248_v7 = vmax.f32 %v2582_v1, %v212_v27  ;;  %v249_v18 = vmax.f32 %v2586_v53, %v214_v30 }
 0x121   :  { %v2620_v27 = vadd.f32 %v2390_v57, %v2212_v9 }
 0x122   :  { %v2596_v19 = vsub.f32 %v337_v23, %v246_v15  ;;  %v2598_v22 = vsub.f32 %v338_v62, %v247_v26  ;;  %v2616_v62 = vsub.f32 %v2212_v9, %v2390_v57  ;;  %v2640_v23 = vsub.f32 %v2221_v12, %v2392_v58 }
 0x123   :  { %v303_v14 = vpop.permute.xlu1 %302  ;;  %v305_v4 = vpop.permute.xlu0 %304 }
 0x124   :  { %v4359_v6 = vmax.f32 %v2598_v22, 0.0  ;;  %v339_v11 = vmin.f32 %v2590_v5, %v303_v14  ;;  %v340_v0 = vmin.f32 %v2594_v55, %v305_v4  ;;  %v4357_v52 = vmax.f32 %v2596_v19, 0.0 }
 0x125   :  { %v250_v8 = vmax.f32 %v2616_v62, %v216_v31  ;;  %v2648_v31 = vsub.f32 %v2226_v13, %v2394_v59 }
 0x126   :  { %v2622_v14 = vsub.f32 %v339_v11, %v248_v7  ;;  %v2624_v4 = vsub.f32 %v340_v0, %v249_v18  ;;  %389 = vrot.lane.b32.xlu0 %v4357_v52, %s2153_s7  ;;  %391 = vrot.lane.b32.xlu1 %v4359_v6, %s2153_s7  ;;  %v2644_v7 = vadd.f32 %v2392_v58, %v2221_v12  ;;  %v4458_v52 = vld [vmem:[#allocation8_spill] sm:$0xff] }
 0x127   :  { %v307_v30 = vpop.permute.xlu1 %306  ;;  %v309_v15 = vpop.permute.xlu0 %308  ;;  %v252_v12 = vmax.f32 %v2648_v31, %v2538_v35  ;;  %v253_v58 = vmax.f32 %v2640_v23, %v2542_v38  ;;  %v4459_v38 = vld [vmem:[#allocation6_spill] sm:$0xff] }
 0x128   :  { %v4356_v9 = vmax.f32 %v2622_v14, 0.0  ;;  %v4358_v57 = vmax.f32 %v2624_v4, 0.0  ;;  %v341_v11 = vmin.f32 %v2620_v27, %v307_v30  ;;  %v342_v26 = vmin.f32 %v2612_v54, %v309_v15 }
 0x129   :  { %v2686_v6 = vadd.f32 %v4458_v52, %v4459_v38 }
 0x12a   :  { %v2654_v18 = vsub.f32 %v341_v11, %v250_v8  ;;  %v2656_v0 = vsub.f32 %v342_v26, %v251_v56  ;;  %393 = vrot.lane.b32.xlu0 %v4356_v9, %s2153_s7  ;;  %395 = vrot.lane.b32.xlu1 %v4358_v57, %s2153_s7  ;;  %v4456_v11 = vld [vmem:[#allocation7_spill] sm:$0xff]  ;;  %v4457_v26 = vld [vmem:[#allocation5_spill] sm:$0xff]  ;;  %v2682_v57 = vsub.f32 %v4459_v38, %v4458_v52 }
 0x12b   :  { %v311_v13 = vpop.permute.xlu1 %310  ;;  %v313_v59 = vpop.permute.xlu0 %312  ;;  %v2674_v9 = vsub.f32 %v4457_v26, %v4456_v11  ;;  %v2678_v35 = vadd.f32 %v4456_v11, %v4457_v26 }
 0x12c   :  { %v4360_v8 = vmax.f32 %v2654_v18, 0.0  ;;  %v343_v30 = vmin.f32 %v2652_v34, %v311_v13  ;;  %v344_v15 = vmin.f32 %v2644_v7, %v313_v59  ;;  %v4460_v59 = vmax.f32 %v2656_v0, 0.0 }
 0x12d   :  { %v254_v11 = vmax.f32 %v2682_v57, %v2544_v39  ;;  %v255_v26 = vmax.f32 %v2674_v9, %v2548_v42 }
 0x12e   :  { %v2688_v56 = vsub.f32 %v343_v30, %v252_v12  ;;  %v2690_v13 = vsub.f32 %v344_v15, %v253_v58  ;;  %397 = vrot.lane.b32.xlu0 %v4360_v8, %s2153_s7  ;;  %399 = vrot.lane.b32.xlu1 %v4460_v59, %s2153_s7  ;;  %v4461_v8 = vld [vmem:[#allocation9_spill] sm:$0xff]  ;;  %v4462_v59 = vld [vmem:[#allocation10_spill] sm:$0xff] }
 0x12f   :  { %v315_v52 = vpop.permute.xlu1 %314  ;;  %v317_v38 = vpop.permute.xlu0 %316  ;;  %v2708_v16 = vsub.f32 %v2249_v20, %v4461_v8  ;;  %v2712_v39 = vadd.f32 %v4461_v8, %v2249_v20  ;;  %v2716_v42 = vsub.f32 %v2254_v21, %v4462_v59  ;;  %v2720_v12 = vadd.f32 %v4462_v59, %v2254_v21 }
 0x130   :  { %v345_v30 = vmin.f32 %v2686_v6, %v315_v52  ;;  %v346_v15 = vmin.f32 %v2678_v35, %v317_v38  ;;  %v4463_v38 = vmax.f32 %v2688_v56, 0.0  ;;  %v4464_v20 = vmax.f32 %v2690_v13, 0.0 }
 0x131   :  { %v256_v8 = vmax.f32 %v2716_v42, %v2550_v43  ;;  %v257_v60 = vmax.f32 %v2708_v16, %v2554_v46 }
 0x132   :  { %v2722_v58 = vsub.f32 %v345_v30, %v254_v11  ;;  %v2724_v52 = vsub.f32 %v346_v15, %v255_v26  ;;  %401 = vrot.lane.b32.xlu0 %v4463_v38, %s2153_s7  ;;  %403 = vrot.lane.b32.xlu1 %v4464_v20, %s2153_s7  ;;  %v4465_v38 = vld [vmem:[#allocation11_spill] sm:$0xff] }
 0x133   :  { %v319_v21 = vpop.permute.xlu1 %318  ;;  %v321_v59 = vpop.permute.xlu0 %320  ;;  %v2742_v17 = vsub.f32 %v2268_v25, %v4465_v38  ;;  %v2746_v43 = vadd.f32 %v4465_v38, %v2268_v25 }
 0x134   :  { %v4363_v11 = vmax.f32 %v2722_v58, 0.0  ;;  %v4362_v26 = vmax.f32 %v2724_v52, 0.0  ;;  %v347_v30 = vmin.f32 %v2720_v12, %v319_v21  ;;  %v348_v15 = vmin.f32 %v2712_v39, %v321_v59 }
 0x135   :  { %v258_v61 = vmax.f32 %v2742_v17, %v2556_v47 }
 0x136   :  { %v2748_v20 = vsub.f32 %v347_v30, %v256_v8  ;;  %v2750_v46 = vsub.f32 %v348_v15, %v257_v60  ;;  %405 = vrot.lane.b32.xlu0 %v4363_v11, %s2153_s7  ;;  %407 = vrot.lane.b32.xlu1 %v4362_v26, %s2153_s7 }
 0x137   :  { %v323_v21 = vpop.permute.xlu1 %322  ;;  %v2758_v59 = vpop.permute.xlu0 %476 }
 0x138   :  { %4466 = vst [vmem:[#allocation7_spill] sm:$0xff] %v2758_v59  ;;  %v4361_v25 = vmax.f32 %v2748_v20, 0.0  ;;  %v4364_v8 = vmax.f32 %v2750_v46, 0.0  ;;  %v349_v60 = vmin.f32 %v2746_v43, %v323_v21 }
 0x13a   :  { %v2765_v30 = vsub.f32 %v349_v60, %v258_v61  ;;  %409 = vrot.lane.b32.xlu0 %v4361_v25, %s2153_s7  ;;  %411 = vrot.lane.b32.xlu1 %v4364_v8, %s2153_s7 }
 0x13b   :  { %v2773_v15 = vpop.permute.xlu1 %474  ;;  %v793_v38 = vpop.permute.xlu0 %792 }
 0x13c   :  { %4467 = vst [vmem:[#allocation5_spill] sm:$0xff] %v2765_v30  ;;  %4468 = vst [vmem:[#allocation8_spill] sm:$0xff] %v2773_v15  ;;  %v4365_v47 = vmax.f32 %v2765_v30, 0.0  ;;  %v831_v60 = vmax.f32 %v2562_v50, %v793_v38 }
 0x13e   :  { %413 = vrot.lane.b32.xlu0 %v4365_v47, %s2153_s7 }
 0x13f   :  { %v2779_v21 = vpop.permute.xlu1 %478  ;;  %v845_v61 = vpop.permute.xlu0 %844 }
 0x140   :  { %4469 = vst [vmem:[#allocation6_spill] sm:$0xff] %v2779_v21  ;;  %v883_v25 = vmin.f32 %v2566_v51, %v845_v61 }
 0x142   :  { %v2783_v26 = vsub.f32 %v883_v25, %v831_v60 }
 0x143   :  { %v795_v11 = vpop.permute.xlu1 %794  ;;  %v797_v8 = vpop.permute.xlu0 %796 }
 0x144   :  { %v4367_v59 = vmax.f32 %v2783_v26, 0.0  ;;  %v832_v47 = vmax.f32 %v2570_v3, %v795_v11  ;;  %v833_v25 = vmax.f32 %v2582_v1, %v797_v8 }
 0x146   :  { %935 = vrot.lane.b32.xlu0 %v4367_v59, %s2153_s7 }
 0x147   :  { %v847_v15 = vpop.permute.xlu1 %846  ;;  %v799_v63 = vpop.permute.xlu0 %798 }
 0x148   :  { %v884_v21 = vmin.f32 %v2574_v10, %v847_v15  ;;  %v834_v10 = vmax.f32 %v2586_v53, %v799_v63 }
 0x14a   :  { %v2791_v30 = vsub.f32 %v884_v21, %v832_v47 }
 0x14b   :  { %v849_v50 = vpop.permute.xlu1 %848  ;;  %v801_v51 = vpop.permute.xlu0 %800 }
 0x14c   :  { %v4379_v38 = vmax.f32 %v2791_v30, 0.0  ;;  %v885_v61 = vmin.f32 %v2590_v5, %v849_v50  ;;  %v835_v8 = vmax.f32 %v2616_v62, %v801_v51 }
 0x14e   :  { %v2796_v60 = vsub.f32 %v885_v61, %v833_v25  ;;  %937 = vrot.lane.b32.xlu1 %v4379_v38, %s2153_s7 }
 0x14f   :  { %v851_v59 = vpop.permute.xlu1 %850  ;;  %v803_v3 = vpop.permute.xlu0 %802 }
 0x150   :  { %v4378_v11 = vmax.f32 %v2796_v60, 0.0  ;;  %v886_v15 = vmin.f32 %v2594_v55, %v851_v59  ;;  %v836_v55 = vmax.f32 %v2608_v2, %v803_v3 }
 0x152   :  { %v2804_v47 = vsub.f32 %v886_v15, %v834_v10  ;;  %939 = vrot.lane.b32.xlu0 %v4378_v11, %s2153_s7 }
 0x153   :  { %v853_v1 = vpop.permute.xlu1 %852  ;;  %v805_v5 = vpop.permute.xlu0 %804 }
 0x154   :  { %v4377_v21 = vmax.f32 %v2804_v47, 0.0  ;;  %v887_v50 = vmin.f32 %v2620_v27, %v853_v1  ;;  %v837_v51 = vmax.f32 %v2648_v31, %v805_v5 }
 0x156   :  { %v2812_v25 = vsub.f32 %v887_v50, %v835_v8  ;;  %941 = vrot.lane.b32.xlu1 %v4377_v21, %s2153_s7 }
 0x157   :  { %v855_v63 = vpop.permute.xlu1 %854  ;;  %v807_v53 = vpop.permute.xlu0 %806 }
 0x158   :  { %v4376_v59 = vmax.f32 %v2812_v25, 0.0  ;;  %v888_v61 = vmin.f32 %v2612_v54, %v855_v63  ;;  %v838_v8 = vmax.f32 %v2640_v23, %v807_v53 }
 0x15a   :  { %v2820_v10 = vsub.f32 %v888_v61, %v836_v55  ;;  %539 = vrot.lane.b32.xlu1 %v2333_v44, %s2153_s7  ;;  %943 = vrot.lane.b32.xlu0 %v4376_v59, %s2153_s7 }
 0x15b   :  { %v857_v62 = vpop.permute.xlu1 %856  ;;  %v809_v27 = vpop.permute.xlu0 %808 }
 0x15c   :  { %v4375_v15 = vmax.f32 %v2820_v10, 0.0  ;;  %v889_v2 = vmin.f32 %v2652_v34, %v857_v62  ;;  %v839_v55 = vmax.f32 %v2682_v57, %v809_v27 }
 0x15e   :  { %v2830_v3 = vsub.f32 %v889_v2, %v837_v51  ;;  %541 = vrot.lane.b32.xlu1 %v2352_v49, %s2153_s7  ;;  %945 = vrot.lane.b32.xlu0 %v4375_v15, %s2153_s7 }
 0x15f   :  { %v859_v54 = vpop.permute.xlu1 %858  ;;  %v811_v1 = vpop.permute.xlu0 %810 }
 0x160   :  { %v4374_v50 = vmax.f32 %v2830_v3, 0.0  ;;  %v890_v31 = vmin.f32 %v2644_v7, %v859_v54  ;;  %v840_v51 = vmax.f32 %v2674_v9, %v811_v1 }
 0x162   :  { %v2840_v5 = vsub.f32 %v890_v31, %v838_v8  ;;  %543 = vrot.lane.b32.xlu1 %v2347_v48, %s2153_s7  ;;  %947 = vrot.lane.b32.xlu0 %v4374_v50, %s2153_s7 }
 0x163   :  { %v861_v34 = vpop.permute.xlu1 %860  ;;  %v813_v63 = vpop.permute.xlu0 %812 }
 0x164   :  { %v4373_v61 = vmax.f32 %v2840_v5, 0.0  ;;  %v891_v23 = vmin.f32 %v2686_v6, %v861_v34  ;;  %v841_v27 = vmax.f32 %v2716_v42, %v813_v63 }
 0x166   :  { %v2850_v53 = vsub.f32 %v891_v23, %v839_v55  ;;  %949 = vrot.lane.b32.xlu0 %v4373_v61, %s2153_s7 }
 0x167   :  { %v863_v7 = vpop.permute.xlu1 %862  ;;  %v815_v62 = vpop.permute.xlu0 %814 }
 0x168   :  { %v4371_v2 = vmax.f32 %v2850_v53, 0.0  ;;  %v892_v54 = vmin.f32 %v2678_v35, %v863_v7  ;;  %v842_v1 = vmax.f32 %v2708_v16, %v815_v62 }
 0x16a   :  { %v2858_v8 = vsub.f32 %v892_v54, %v840_v51  ;;  %951 = vrot.lane.b32.xlu0 %v4371_v2, %s2153_s7 }
 0x16b   :  { %v865_v6 = vpop.permute.xlu1 %864  ;;  %v817_v57 = vpop.permute.xlu0 %816 }
 0x16c   :  { %v4370_v31 = vmax.f32 %v2858_v8, 0.0  ;;  %v893_v34 = vmin.f32 %v2720_v12, %v865_v6  ;;  %v843_v63 = vmax.f32 %v2742_v17, %v817_v57 }
 0x16e   :  { %v2866_v55 = vsub.f32 %v893_v34, %v841_v27  ;;  %953 = vrot.lane.b32.xlu0 %v4370_v31, %s2153_s7 }
 0x16f   :  { %v867_v9 = vpop.permute.xlu1 %866  ;;  %v2871_v35 = vpop.permute.xlu0 %519 }
 0x170   :  { %4470 = vst [vmem:[#allocation9_spill] sm:$0xff] %v2871_v35  ;;  %v4369_v23 = vmax.f32 %v2866_v55, 0.0  ;;  %v894_v7 = vmin.f32 %v2712_v39, %v867_v9  ;;  %v558_v39 = vmul.f32 %v2871_v35, %v2263_v24 }
 0x172   :  { %v2876_v42 = vsub.f32 %v894_v7, %v842_v1  ;;  %955 = vrot.lane.b32.xlu0 %v4369_v23, %s2153_s7 }
 0x173   :  { %v869_v12 = vpop.permute.xlu1 %868  ;;  %v2884_v6 = vpop.permute.xlu0 %523 }
 0x174   :  { %v4368_v51 = vmax.f32 %v2876_v42, 0.0  ;;  %v895_v54 = vmin.f32 %v2746_v43, %v869_v12  ;;  %4471 = vst [vmem:[#allocation10_spill] sm:$0xff] %v2884_v6  ;;  %v560_v43 = vmul.f32 %v2884_v6, %v2277_v28 }
 0x176   :  { %v2886_v16 = vsub.f32 %v895_v54, %v843_v63  ;;  %957 = vrot.lane.b32.xlu0 %v4368_v51, %s2153_s7 }
 0x177   :  { %v2893_v62 = vpop.permute.xlu1 %521  ;;  %v2906_v34 = vpop.permute.xlu0 %527 }
 0x178   :  { %4472 = vst [vmem:[#allocation11_spill] sm:$0xff] %v2893_v62  ;;  %v4372_v27 = vmax.f32 %v2886_v16, 0.0  ;;  %v559_v17 = vmul.f32 %v2893_v62, %v2282_v29  ;;  %4474 = vst [vmem:[#allocation23_spill] sm:$0xff] %v2906_v34  ;;  %v562_v9 = vmul.f32 %v2906_v34, %v2291_v32 }
 0x17a   :  { %959 = vrot.lane.b32.xlu1 %v4372_v27, %s2153_s7  ;;  %584 = vrot.lane.b32.xlu0 %v558_v39, %s2153_s7 }
 0x17b   :  { %v2904_v57 = vpop.permute.xlu1 %525 }
 0x17c   :  { %4473 = vst [vmem:[#allocation22_spill] sm:$0xff] %v2904_v57  ;;  %v561_v24 = vmul.f32 %v2904_v57, %v2296_v33  ;;  %v4483_v57 = vmax.f32 %v2791_v30, 0.0  ;;  %v4487_v30 = vmax.f32 %v2804_v47, 0.0 }
 0x17e   :  { %586 = vrot.lane.b32.xlu1 %v559_v17, %s2153_s7  ;;  %588 = vrot.lane.b32.xlu0 %v560_v43, %s2153_s7 }
 0x17f   :  { %v2914_v1 = vpop.permute.xlu1 %529 }
 0x180   :  { %4475 = vst [vmem:[#allocation24_spill] sm:$0xff] %v2914_v1  ;;  %v563_v7 = vmul.f32 %v2914_v1, %v2310_v37 }
 0x182   :  { %590 = vrot.lane.b32.xlu1 %v561_v24, %s2153_s7  ;;  %592 = vrot.lane.b32.xlu0 %v562_v9, %s2153_s7 }
 0x183   :  { %v2920_v12 = vpop.permute.xlu1 %531 }
 0x184   :  { %4476 = vst [vmem:[#allocation25_spill] sm:$0xff] %v2920_v12  ;;  %v564_v63 = vmul.f32 %v2920_v12, %v2305_v36 }
 0x186   :  { %594 = vrot.lane.b32.xlu1 %v563_v7, %s2153_s7  ;;  %596 = vrot.lane.b32.xlu0 %v564_v63, %s2153_s7 }
 0x187   :  { %v2926_v54 = vpop.permute.xlu1 %533 }
 0x188   :  { %4477 = vst [vmem:[#allocation26_spill] sm:$0xff] %v2926_v54  ;;  %v565_v51 = vmul.f32 %v2926_v54, %v2324_v41 }
 0x18a   :  { %598 = vrot.lane.b32.xlu1 %v565_v51, %s2153_s7 }
 0x18b   :  { %v2931_v23 = vpop.permute.xlu1 %535 }
 0x18c   :  { %4478 = vst [vmem:[#allocation27_spill] sm:$0xff] %v2931_v23  ;;  %v566_v31 = vmul.f32 %v2931_v23, %v2319_v40 }
 0x18e   :  { %987 = vrot.lane.b32.xlu1 %v558_v39, %s2154_s8  ;;  %600 = vrot.lane.b32.xlu0 %v566_v31, %s2153_s7 }
 0x18f   :  { %v2937_v36 = vpop.permute.xlu1 %537 }
 0x190   :  { %4479 = vst [vmem:[#allocation28_spill] sm:$0xff] %v2937_v36  ;;  %v567_v2 = vmul.f32 %v2937_v36, %v2338_v45 }
 0x192   :  { %991 = vrot.lane.b32.xlu1 %v560_v43, %s2154_s8  ;;  %989 = vrot.lane.b32.xlu0 %v559_v17, %s2154_s8 }
 0x196   :  { %602 = vrot.lane.b32.xlu1 %v567_v2, %s2153_s7  ;;  %993 = vrot.lane.b32.xlu0 %v561_v24, %s2154_s8 }
 0x198   :  { %v2946_v40 = vpop.permute.xlu0 %389  ;;  %v392_v39 = vpop.permute.xlu1 %391 }
 0x19a   :  { %995 = vrot.lane.b32.xlu0 %v562_v9, %s2154_s8 }
 0x19c   :  { %v2949_v27 = vpop.permute.xlu0 %393  ;;  %v396_v17 = vpop.permute.xlu1 %395 }
 0x19e   :  { %997 = vrot.lane.b32.xlu0 %v563_v7, %s2154_s8 }
 0x1a0   :  { %v2953_v43 = vpop.permute.xlu0 %397  ;;  %v2956_v61 = vpop.permute.xlu1 %399 }
 0x1a2   :  { %999 = vrot.lane.b32.xlu0 %v564_v63, %s2154_s8 }
 0x1a4   :  { %v2958_v24 = vpop.permute.xlu0 %401  ;;  %v2961_v9 = vpop.permute.xlu1 %403 }
 0x1a6   :  { %1001 = vrot.lane.b32.xlu0 %v565_v51, %s2154_s8 }
 0x1a8   :  { %v2963_v7 = vpop.permute.xlu0 %405  ;;  %v2965_v50 = vpop.permute.xlu1 %407 }
 0x1aa   :  { %1003 = vrot.lane.b32.xlu0 %v566_v31, %s2154_s8 }
 0x1ac   :  { %v2967_v63 = vpop.permute.xlu0 %409  ;;  %v2969_v51 = vpop.permute.xlu1 %411 }
 0x1ae   :  { %1005 = vrot.lane.b32.xlu0 %v567_v2, %s2154_s8 }
 0x1b0   :  { %v2971_v15 = vpop.permute.xlu0 %413 }
 0x1b8   :  { %v936_v59 = vpop.permute.xlu0 %935 }
 0x1c0   :  { %v938_v31 = vpop.permute.xlu1 %937 }
 0x1c1   :  { %v2988_v6 = vmul.f32 %v938_v31, %v4483_v57 }
 0x1c3   :  { %4484 = vst [vmem:[#allocation32_spill] sm:$0xff] %v2988_v6 }
 0x1c4   :  { %v940_v21 = vpop.permute.xlu0 %939 }
 0x1c8   :  { %v942_v11 = vpop.permute.xlu1 %941 }
 0x1c9   :  { %v3004_v57 = vmul.f32 %v942_v11, %v4487_v30  ;;  %v4493_v11 = vmax.f32 %v2820_v10, 0.0  ;;  %v4499_v10 = vmax.f32 %v2886_v16, 0.0  ;;  %v4505_v16 = vmax.f32 %v2624_v4, 0.0 }
 0x1ca   :  { %v4511_v4 = vmax.f32 %v2876_v42, 0.0  ;;  %v4515_v42 = vmax.f32 %v2622_v14, 0.0  ;;  %v4519_v14 = vmax.f32 %v2656_v0, 0.0 }
 0x1cb   :  { %4488 = vst [vmem:[#allocation34_spill] sm:$0xff] %v3004_v57 }
 0x1cc   :  { %v2973_v38 = vpop.permute.xlu1 %539  ;;  %v944_v36 = vpop.permute.xlu0 %943 }
 0x1cd   :  { %4480 = vst [vmem:[#allocation29_spill] sm:$0xff] %v2973_v38  ;;  %v568_v2 = vmul.f32 %v2973_v38, %v2333_v44 }
 0x1cf   :  { %1007 = vrot.lane.b32.xlu0 %v568_v2, %s2154_s8 }
 0x1d0   :  { %v2978_v23 = vpop.permute.xlu1 %541  ;;  %v946_v54 = vpop.permute.xlu0 %945 }
 0x1d1   :  { %4481 = vst [vmem:[#allocation30_spill] sm:$0xff] %v2978_v23  ;;  %v569_v12 = vmul.f32 %v2978_v23, %v2352_v49  ;;  %v4485_v23 = vmax.f32 %v2796_v60, 0.0  ;;  %v4489_v60 = vmax.f32 %v2783_v26, 0.0  ;;  %v3023_v47 = vmul.f32 %v946_v54, %v4493_v11 }
 0x1d2   :  { %v4495_v26 = vmax.f32 %v2830_v3, 0.0  ;;  %v4501_v3 = vmax.f32 %v2598_v22, 0.0  ;;  %v4507_v11 = vmax.f32 %v2858_v8, 0.0 }
 0x1d3   :  { %606 = vrot.lane.b32.xlu1 %v569_v12, %s2153_s7  ;;  %1009 = vrot.lane.b32.xlu0 %v569_v12, %s2154_s8  ;;  %v2997_v38 = vmul.f32 %v940_v21, %v4485_v23  ;;  %v3011_v21 = vmul.f32 %v936_v59, %v4489_v60  ;;  %v4491_v23 = vmax.f32 %v2812_v25, 0.0  ;;  %4494 = vst [vmem:[#allocation37_spill] sm:$0xff] %v3023_v47  ;;  %v4503_v60 = vmax.f32 %v2850_v53, 0.0 }
 0x1d4   :  { %v2984_v1 = vpop.permute.xlu1 %543  ;;  %v948_v34 = vpop.permute.xlu0 %947  ;;  %v4509_v53 = vmax.f32 %v2866_v55, 0.0  ;;  %v4513_v55 = vmax.f32 %v2596_v19, 0.0  ;;  %v4517_v19 = vmax.f32 %v2654_v18, 0.0 }
 0x1d5   :  { %4482 = vst [vmem:[#allocation31_spill] sm:$0xff] %v2984_v1  ;;  %v570_v44 = vmul.f32 %v2984_v1, %v2347_v48  ;;  %4486 = vst [vmem:[#allocation33_spill] sm:$0xff] %v2997_v38  ;;  %v3015_v31 = vmul.f32 %v944_v36, %v4491_v23  ;;  %v3029_v59 = vmul.f32 %v948_v34, %v4495_v26 }
 0x1d6   :  { %4490 = vst [vmem:[#allocation35_spill] sm:$0xff] %v3011_v21  ;;  %v3047_v34 = vmul.f32 %v392_v39, %v4501_v3 }
 0x1d7   :  { %1054 = vrot.lane.b32.xlu1 %v2988_v6, %s2155_s9  ;;  %1011 = vrot.lane.b32.xlu0 %v570_v44, %s2154_s8  ;;  %4492 = vst [vmem:[#allocation36_spill] sm:$0xff] %v3015_v31  ;;  %4496 = vst [vmem:[#allocation38_spill] sm:$0xff] %v3029_v59 }
 0x1d8   :  { %v950_v12 = vpop.permute.xlu0 %949  ;;  %4502 = vst [vmem:[#allocation41_spill] sm:$0xff] %v3047_v34 }
 0x1db   :  { %604 = vrot.lane.b32.xlu0 %v568_v2, %s2153_s7  ;;  %1056 = vrot.lane.b32.xlu1 %v2997_v38, %s2155_s9 }
 0x1dc   :  { %v952_v48 = vpop.permute.xlu0 %951 }
 0x1dd   :  { %v3051_v23 = vmul.f32 %v952_v48, %v4503_v60 }
 0x1df   :  { %608 = vrot.lane.b32.xlu0 %v570_v44, %s2153_s7  ;;  %1058 = vrot.lane.b32.xlu1 %v3004_v57, %s2155_s9  ;;  %v4497_v44 = vmax.f32 %v2840_v5, 0.0  ;;  %4504 = vst [vmem:[#allocation42_spill] sm:$0xff] %v3051_v23  ;;  %s2158_s7 = smov 118  }
 0x1e0   :  { %v954_v2 = vpop.permute.xlu0 %953 }
 0x1e1   :  { %v3035_v30 = vmul.f32 %v950_v12, %v4497_v44  ;;  %v3059_v12 = vmul.f32 %v396_v17, %v4505_v16  ;;  %v3063_v22 = vmul.f32 %v954_v2, %v4507_v11  ;;  %v3092_v2 = vmul.f32 %v2946_v40, %v4513_v55  ;;  %v3213_v44 = vld [vmem:[%s4344_s0 + $0x20] sm:$0xff] }
 0x1e2   :  { %v3112_v40 = vmul.f32 %v2953_v43, %v4517_v19 }
 0x1e3   :  { %1052 = vrot.lane.b32.xlu0 %v3011_v21, %s2155_s9  ;;  %1060 = vrot.lane.b32.xlu1 %v3015_v31, %s2155_s9  ;;  %4498 = vst [vmem:[#allocation39_spill] sm:$0xff] %v3035_v30  ;;  %4506 = vst [vmem:[#allocation43_spill] sm:$0xff] %v3059_v12 }
 0x1e4   :  { %v956_v25 = vpop.permute.xlu0 %955  ;;  %4508 = vst [vmem:[#allocation44_spill] sm:$0xff] %v3063_v22  ;;  %4514 = vst [vmem:[#allocation47_spill] sm:$0xff] %v3092_v2 }
 0x1e5   :  { %v3073_v48 = vmul.f32 %v956_v25, %v4509_v53  ;;  %4518 = vst [vmem:[#allocation49_spill] sm:$0xff] %v3112_v40  ;;  %v3197_v25 = vld [vmem:[%s4344_s0 + $0x18] sm:$0xff]  ;;  %v2090_v53 = vld [vmem:[%s4345_s1 + $0x30] sm:$0xff] }
 0x1e6   :  { %4532 = vst [vmem:[#allocation57_spill] sm:$0xff] %v3197_v25 }
 0x1e7   :  { %1062 = vrot.lane.b32.xlu1 %v3023_v47, %s2155_s9  ;;  %4510 = vst [vmem:[#allocation45_spill] sm:$0xff] %v3073_v48 }
 0x1e8   :  { %v958_v5 = vpop.permute.xlu0 %957 }
 0x1e9   :  { %v3081_v8 = vmul.f32 %v958_v5, %v4511_v4  ;;  %v3231_v5 = vld [vmem:[%s4344_s0 + $0x28] sm:$0xff] }
 0x1eb   :  { %1064 = vrot.lane.b32.xlu1 %v3029_v59, %s2155_s9  ;;  %4512 = vst [vmem:[#allocation46_spill] sm:$0xff] %v3081_v8 }
 0x1ec   :  { %v960_v36 = vpop.permute.xlu1 %959  ;;  %v3065_v39 = vpop.permute.xlu0 %584 }
 0x1ed   :  { %v3039_v54 = vmul.f32 %v960_v36, %v4499_v10  ;;  %v4533_v36 = vmax.f32 %v2750_v46, 0.0  ;;  %v4535_v10 = vld [vmem:[#allocation5_spill] sm:$0xff] }
 0x1ee   :  { %v4536_v3 = vmax.f32 %v4535_v10, 0.0 }
 0x1ef   :  { %4500 = vst [vmem:[#allocation40_spill] sm:$0xff] %v3039_v54  ;;  %1076 = vrot.lane.b32.xlu0 %v3039_v54, %s2155_s9  ;;  %1066 = vrot.lane.b32.xlu1 %v3035_v30, %s2155_s9  ;;  %v4539_v54 = vld [vmem:[#allocation12_spill] sm:$0xff] }
 0x1f0   :  { %v3083_v17 = vpop.permute.xlu0 %588  ;;  %v3220_v46 = vmul.f32 %v2971_v15, %v4536_v3  ;;  %v2089_v15 = vld [vmem:[%s4345_s1] sm:$0xff] }
 0x1f2   :  { %4537 = vst [vmem:[#allocation5_spill] sm:$0xff] %v3220_v46 }
 0x1f3   :  { %651 = vrot.lane.b32.xlu0 %v3047_v34, %s2155_s9  ;;  %1068 = vrot.lane.b32.xlu1 %v3051_v23, %s2155_s9 }
 0x1f7   :  { %655 = vrot.lane.b32.xlu0 %v3059_v12, %s2155_s9  ;;  %1070 = vrot.lane.b32.xlu1 %v3063_v22, %s2155_s9 }
 0x1fb   :  { %1575 = vrot.lane.b32.xlu0 %v2282_v29, %s2156_s10  ;;  %1072 = vrot.lane.b32.xlu1 %v3073_v48, %s2155_s9  ;;  %v3094_v29 = vpop.permute.xlu0 %592 }
 0x1ff   :  { %1577 = vrot.lane.b32.xlu0 %v2277_v28, %s2156_s10  ;;  %1074 = vrot.lane.b32.xlu1 %v3081_v8, %s2155_s9  ;;  %v3103_v28 = vmul.f32 %v2949_v27, %v4515_v42  ;;  %v3123_v27 = vmul.f32 %v2956_v61, %v4519_v14  ;;  %v2091_v42 = vld [vmem:[%s4345_s1 + $0x40] sm:$0xff]  ;;  %v2092_v14 = vld [vmem:[%s4345_s1 + $0x50] sm:$0xff] }
 0x201   :  { %4516 = vst [vmem:[#allocation48_spill] sm:$0xff] %v3103_v28  ;;  %4520 = vst [vmem:[#allocation50_spill] sm:$0xff] %v3123_v27 }
 0x203   :  { %1579 = vrot.lane.b32.xlu0 %v2296_v33, %s2156_s10  ;;  %649 = vrot.lane.b32.xlu1 %v3092_v2, %s2155_s9  ;;  %v3114_v33 = vpop.permute.xlu0 %596 }
 0x207   :  { %653 = vrot.lane.b32.xlu1 %v3103_v28, %s2155_s9  ;;  %1581 = vrot.lane.b32.xlu0 %v2291_v32, %s2156_s10  ;;  %v3125_v26 = vpop.permute.xlu0 %600  ;;  %v4521_v32 = vmax.f32 %v2688_v56, 0.0 }
 0x209   :  { %v3134_v18 = vmul.f32 %v2958_v24, %v4521_v32 }
 0x20b   :  { %657 = vrot.lane.b32.xlu1 %v3112_v40, %s2155_s9  ;;  %1583 = vrot.lane.b32.xlu0 %v2310_v37, %s2156_s10  ;;  %4522 = vst [vmem:[#allocation51_spill] sm:$0xff] %v3134_v18  ;;  %v3136_v43 = vpop.permute.xlu0 %989  ;;  %v4523_v37 = vmax.f32 %v2690_v13, 0.0 }
 0x20d   :  { %v3145_v0 = vmul.f32 %v2961_v9, %v4523_v37  ;;  %v3181_v9 = vld [vmem:[%s4344_s0 + $0x10] sm:$0xff]  ;;  %v2093_v37 = vld [vmem:[%s4345_s1 + $0x60] sm:$0xff] }
 0x20f   :  { %659 = vrot.lane.b32.xlu1 %v3123_v27, %s2155_s9  ;;  %1587 = vrot.lane.b32.xlu0 %v2324_v41, %s2156_s10  ;;  %4524 = vst [vmem:[#allocation52_spill] sm:$0xff] %v3145_v0  ;;  %v4525_v41 = vmax.f32 %v2722_v58, 0.0  ;;  %v3156_v61 = vpop.permute.xlu0 %993  ;;  %v3172_v58 = vpop.permute.xlu1 %586 }
 0x211   :  { %v3154_v56 = vmul.f32 %v2963_v7, %v4525_v41 }
 0x213   :  { %661 = vrot.lane.b32.xlu1 %v3134_v18, %s2155_s9  ;;  %1591 = vrot.lane.b32.xlu0 %v2338_v45, %s2156_s10  ;;  %4526 = vst [vmem:[#allocation53_spill] sm:$0xff] %v3154_v56  ;;  %v3163_v45 = vld [vmem:[%s4344_s0 + $0x8] sm:$0xff]  ;;  %v3174_v24 = vpop.permute.xlu0 %995  ;;  %v3190_v7 = vpop.permute.xlu1 %590 }
 0x214   :  { %4527 = vst [vmem:[#allocation54_spill] sm:$0xff] %v3163_v45  ;;  %v3310_v8 = vmul.f32 %v3163_v45, %v4539_v54 }
 0x216   :  { %v1027_v30 = vadd.f32 %v3136_v43, %v3310_v8 }
 0x217   :  { %663 = vrot.lane.b32.xlu1 %v3145_v0, %s2155_s9  ;;  %1595 = vrot.lane.b32.xlu0 %v2352_v49, %s2156_s10  ;;  %v4528_v49 = vmax.f32 %v2724_v52, 0.0  ;;  %v4530_v52 = vmax.f32 %v2748_v20, 0.0  ;;  %v3204_v20 = vmul.f32 %v2969_v51, %v4533_v36  ;;  %v3222_v51 = vpop.permute.xlu1 %594 }
 0x219   :  { %v3170_v13 = vmul.f32 %v2965_v50, %v4528_v49  ;;  %v3188_v50 = vmul.f32 %v2967_v63, %v4530_v52  ;;  %4534 = vst [vmem:[#allocation58_spill] sm:$0xff] %v3204_v20  ;;  %v3206_v63 = vpop.permute.xlu0 %997  ;;  %v3272_v52 = vld [vmem:[%s4344_s0] sm:$0xff] }
 0x21b   :  { %665 = vrot.lane.b32.xlu1 %v3154_v56, %s2155_s9  ;;  %1327 = vrot.lane.b32.xlu0 %v3163_v45, %s2157_s13  ;;  %4529 = vst [vmem:[#allocation55_spill] sm:$0xff] %v3170_v13  ;;  %4531 = vst [vmem:[#allocation56_spill] sm:$0xff] %v3188_v50  ;;  %v3235_v16 = vpop.permute.xlu1 %598 }
 0x21d   :  { %v3224_v60 = vpop.permute.xlu0 %999 }
 0x21f   :  { %667 = vrot.lane.b32.xlu1 %v3170_v13, %s2155_s9  ;;  %1329 = vrot.lane.b32.xlu0 %v3181_v9, %s2157_s13  ;;  %v3247_v4 = vpop.permute.xlu1 %987 }
 0x221   :  { %v3241_v11 = vpop.permute.xlu0 %1001 }
 0x223   :  { %669 = vrot.lane.b32.xlu1 %v3188_v50, %s2155_s9  ;;  %1331 = vrot.lane.b32.xlu0 %v3197_v25, %s2157_s13  ;;  %v992_v19 = vpop.permute.xlu1 %991 }
 0x225   :  { %v3249_v55 = vpop.permute.xlu0 %1003 }
 0x227   :  { %671 = vrot.lane.b32.xlu1 %v3204_v20, %s2155_s9  ;;  %1333 = vrot.lane.b32.xlu0 %v3213_v44, %s2157_s13  ;;  %v3265_v41 = vpop.permute.xlu1 %602 }
 0x229   :  { %v3259_v32 = vpop.permute.xlu0 %1005 }
 0x22b   :  { %673 = vrot.lane.b32.xlu1 %v3220_v46, %s2155_s9  ;;  %1335 = vrot.lane.b32.xlu0 %v3231_v5, %s2157_s13 }
 0x22f   :  { %1573 = vrot.lane.b32.xlu1 %v2089_v15, %s2156_s10 }
 0x233   :  { %1585 = vrot.lane.b32.xlu1 %v2090_v53, %s2156_s10 }
 0x237   :  { %1589 = vrot.lane.b32.xlu1 %v2091_v42, %s2156_s10 }
 0x23b   :  { %1593 = vrot.lane.b32.xlu1 %v2092_v14, %s2156_s10 }
 0x23f   :  { %1597 = vrot.lane.b32.xlu1 %v2093_v37, %s2156_s10 }
 0x241   :  { %v3267_v49 = vpop.permute.xlu0 %1007 }
 0x243   :  { %1325 = vrot.lane.b32.xlu1 %v3272_v52, %s2157_s13 }
 0x245   :  { %v3276_v36 = vpop.permute.xlu1 %606  ;;  %v3278_v10 = vpop.permute.xlu0 %1009 }
 0x249   :  { %v1055_v3 = vpop.permute.xlu1 %1054  ;;  %v3280_v15 = vpop.permute.xlu0 %1011 }
 0x24a   :  { %v1092_v31 = vsub.f32 %v1027_v30, %v1055_v3  ;;  %v4542_v30 = vld [vmem:[#allocation17_spill] sm:$0xff] }
 0x24b   :  { %v3343_v3 = vmul.f32 %v3213_v44, %v4542_v30 }
 0x24c   :  { %v1105_v59 = vadd.f32 1e-06, %v1092_v31  ;;  %v4543_v31 = vld [vmem:[#allocation16_spill] sm:$0xff] }
 0x24d   :  { %v1057_v53 = vpop.permute.xlu1 %1056  ;;  %v3282_v42 = vpop.permute.xlu0 %604 }
 0x251   :  { %v1059_v14 = vpop.permute.xlu1 %1058  ;;  %v3284_v1 = vpop.permute.xlu0 %608 }
 0x252   :  { %4538 = vst [vmem:[#allocation59_spill] sm:$0xff] %v3284_v1 }
 0x255   :  { %v1061_v37 = vpop.permute.xlu1 %1060  ;;  %v3286_v62 = vpop.permute.xlu0 %1052 }
 0x259   :  { %v1063_v35 = vpop.permute.xlu1 %1062 }
 0x25d   :  { %v1065_v46 = vpop.permute.xlu1 %1064 }
 0x261   :  { %v3288_v20 = vpop.permute.xlu1 %1066  ;;  %v3290_v50 = vpop.permute.xlu0 %1076 }
 0x265   :  { %v3292_v13 = vpop.permute.xlu1 %1068  ;;  %v3294_v0 = vpop.permute.xlu0 %651 }
 0x269   :  { %v3296_v40 = vpop.permute.xlu1 %1070  ;;  %v3298_v28 = vpop.permute.xlu0 %655 }
 0x26d   :  { %v3300_v2 = vpop.permute.xlu1 %1072  ;;  %v1576_v56 = vpop.permute.xlu0 %1575 }
 0x26e   :  { %v1613_v18 = vsub.f32 %v3163_v45, %v1576_v56  ;;  %v624_v45 = vadd.f32 %v3172_v58, %v3310_v8 }
 0x270   :  { %v1626_v27 = vmul.f32 %v1613_v18, %v1613_v18  ;;  %v3320_v18 = vld [vmem:[%s4344_s0 + $0x30] sm:$0xff] }
 0x271   :  { %v3303_v12 = vpop.permute.xlu1 %1074  ;;  %v3305_v34 = vpop.permute.xlu0 %1577 }
 0x272   :  { %1653 = vrot.lane.b32.xlu0 %v1626_v27, %s2158_s7  ;;  %v4540_v27 = vld [vmem:[#allocation15_spill] sm:$0xff] }
 0x273   :  { %v3326_v54 = vmul.f32 %v3181_v9, %v4540_v27 }
 0x275   :  { %v3312_v48 = vpop.permute.xlu1 %649  ;;  %v1580_v22 = vpop.permute.xlu0 %1579  ;;  %v1028_v43 = vadd.f32 %v992_v19, %v3326_v54 }
 0x276   :  { %v1615_v56 = vsub.f32 %v3197_v25, %v1580_v22  ;;  %1337 = vrot.lane.b32.xlu0 %v3320_v18, %s2157_s13  ;;  %v4541_v22 = vld [vmem:[#allocation14_spill] sm:$0xff] }
 0x277   :  { %v3334_v23 = vmul.f32 %v3197_v25, %v4541_v22  ;;  %v1093_v47 = vsub.f32 %v1028_v43, %v1057_v53  ;;  %v1030_v22 = vadd.f32 %v3174_v24, %v3343_v3  ;;  %v3352_v53 = vmul.f32 %v3231_v5, %v4543_v31 }
 0x278   :  { %v1628_v38 = vmul.f32 %v1615_v56, %v1615_v56 }
 0x279   :  { %v3328_v21 = vpop.permute.xlu1 %653  ;;  %v1029_v27 = vadd.f32 %v3156_v61, %v3334_v23  ;;  %v1106_v19 = vadd.f32 1e-06, %v1093_v47  ;;  %v1095_v43 = vsub.f32 %v1030_v22, %v1061_v37  ;;  %v1031_v30 = vadd.f32 %v3206_v63, %v3352_v53  ;;  %v4544_v47 = vld [vmem:[#allocation19_spill] sm:$0xff]  ;;  %v4545_v63 = vld [vmem:[#allocation18_spill] sm:$0xff] }
 0x27a   :  { %1657 = vrot.lane.b32.xlu0 %v1628_v38, %s2158_s7  ;;  %v3371_v37 = vld [vmem:[%s4344_s0 + $0x38] sm:$0xff] }
 0x27b   :  { %v1094_v56 = vsub.f32 %v1029_v27, %v1059_v14  ;;  %v3361_v14 = vmul.f32 %v3320_v18, %v4544_v47  ;;  %v1108_v24 = vadd.f32 1e-06, %v1095_v43  ;;  %v1096_v27 = vsub.f32 %v1031_v30, %v1063_v35  ;;  %v4546_v43 = vld [vmem:[#allocation21_spill] sm:$0xff] }
 0x27d   :  { %v3336_v57 = vpop.permute.xlu1 %657  ;;  %v1107_v61 = vadd.f32 1e-06, %v1094_v56  ;;  %v1032_v31 = vadd.f32 %v3224_v60, %v3361_v14  ;;  %v500_v56 = vmul.f32 %v3371_v37, %v4545_v63  ;;  %v1109_v22 = vadd.f32 1e-06, %v1096_v27  ;;  %v3382_v60 = vld [vmem:[%s4344_s0 + $0x40] sm:$0xff] }
 0x27e   :  { %1132 = vrot.lane.b32.xlu0 %v1105_v59, %s2152_s17  ;;  %v3386_v30 = vmul.f32 %v3382_v60, %v4546_v43 }
 0x27f   :  { %v1033_v35 = vadd.f32 %v3241_v11, %v500_v56  ;;  %v3397_v11 = vld [vmem:[%s4344_s0 + $0x48] sm:$0xff] }
 0x281   :  { %v3345_v38 = vpop.permute.xlu1 %659  ;;  %v1098_v63 = vsub.f32 %v1033_v35, %v3288_v20  ;;  %v4548_v35 = vld [vmem:[#allocation8_spill] sm:$0xff] }
 0x282   :  { %1134 = vrot.lane.b32.xlu0 %v1106_v19, %s2152_s17 }
 0x283   :  { %v1111_v43 = vadd.f32 1e-06, %v1098_v63 }
 0x285   :  { %v3354_v59 = vpop.permute.xlu1 %661 }
 0x286   :  { %1136 = vrot.lane.b32.xlu0 %v1107_v61, %s2152_s17  ;;  %v1097_v61 = vsub.f32 %v1032_v31, %v1065_v46  ;;  %v1034_v46 = vadd.f32 %v3249_v55, %v3386_v30  ;;  %v4547_v31 = vld [vmem:[#allocation20_spill] sm:$0xff]  ;;  %v3409_v55 = vld [vmem:[%s4344_s0 + $0x50] sm:$0xff] }
 0x289   :  { %v3363_v19 = vpop.permute.xlu1 %663 }
 0x28a   :  { %1138 = vrot.lane.b32.xlu0 %v1108_v24, %s2152_s17  ;;  %v1110_v24 = vadd.f32 1e-06, %v1097_v61  ;;  %v1099_v61 = vsub.f32 %v1034_v46, %v3292_v13  ;;  %v4549_v46 = vld [vmem:[#allocation6_spill] sm:$0xff] }
 0x28c   :  { %v1112_v1 = vadd.f32 1e-06, %v1099_v61 }
 0x28d   :  { %v3375_v47 = vpop.permute.xlu1 %665 }
 0x28e   :  { %1140 = vrot.lane.b32.xlu0 %v1109_v22, %s2152_s17  ;;  %v502_v22 = vmul.f32 %v3397_v11, %v4547_v31 }
 0x290   :  { %v1035_v20 = vadd.f32 %v3259_v32, %v502_v22  ;;  %v3424_v32 = vld [vmem:[%s4344_s0 + $0x60] sm:$0xff] }
 0x291   :  { %v3389_v27 = vpop.permute.xlu1 %667 }
 0x292   :  { %1142 = vrot.lane.b32.xlu0 %v1110_v24, %s2152_s17  ;;  %v3413_v24 = vmul.f32 %v3409_v55, %v4548_v35  ;;  %v1100_v63 = vsub.f32 %v1035_v20, %v3296_v40 }
 0x294   :  { %v1036_v13 = vadd.f32 %v3267_v49, %v3413_v24  ;;  %v1113_v35 = vadd.f32 1e-06, %v1100_v63 }
 0x295   :  { %v3402_v6 = vpop.permute.xlu1 %669 }
 0x296   :  { %1144 = vrot.lane.b32.xlu0 %v1111_v43, %s2152_s17  ;;  %v3428_v43 = vmul.f32 %v3424_v32, %v4549_v46  ;;  %v1101_v61 = vsub.f32 %v1036_v13, %v3300_v2  ;;  %v689_v2 = vsub.f32 %v624_v45, %v3294_v0  ;;  %v1614_v13 = vsub.f32 %v3181_v9, %v3305_v34  ;;  %v4551_v45 = vld [vmem:[#allocation7_spill] sm:$0xff] }
 0x297   :  { %v628_v0 = vadd.f32 %v3222_v51, %v3352_v53  ;;  %v630_v51 = vadd.f32 %v3235_v16, %v500_v56 }
 0x298   :  { %v1038_v20 = vadd.f32 %v3280_v15, %v3428_v43  ;;  %v1114_v49 = vadd.f32 1e-06, %v1101_v61  ;;  %v702_v58 = vadd.f32 1e-06, %v689_v2  ;;  %v1627_v61 = vmul.f32 %v1614_v13, %v1614_v13 }
 0x299   :  { %v3416_v31 = vpop.permute.xlu1 %671  ;;  %v695_v13 = vsub.f32 %v630_v51, %v3363_v19 }
 0x29a   :  { %1146 = vrot.lane.b32.xlu0 %v1112_v1, %s2152_s17  ;;  %v1103_v1 = vsub.f32 %v1038_v20, %v3290_v50  ;;  %v4550_v50 = vld [vmem:[#allocation13_spill] sm:$0xff]  ;;  %v1582_v20 = vpop.permute.xlu0 %1581 }
 0x29b   :  { %v493_v8 = vmul.f32 %v3272_v52, %v4550_v50  ;;  %v708_v56 = vadd.f32 1e-06, %v695_v13  ;;  %v3554_v13 = vmul.f32 %v3272_v52, %v3272_v52 }
 0x29c   :  { %v1116_v63 = vadd.f32 1e-06, %v1103_v1 }
 0x29d   :  { %v3431_v40 = vpop.permute.xlu1 %673  ;;  %v1026_v34 = vadd.f32 %v3247_v4, %v493_v8 }
 0x29e   :  { %1148 = vrot.lane.b32.xlu0 %v1113_v35, %s2152_s17  ;;  %v626_v35 = vadd.f32 %v3190_v7, %v3334_v23  ;;  %v3459_v23 = vld [vmem:[%s4344_s0 + $0x58] sm:$0xff]  ;;  %v1584_v53 = vpop.permute.xlu0 %1583 }
 0x29f   :  { %v504_v7 = vmul.f32 %v3459_v23, %v4551_v45 }
 0x2a1   :  { %v1574_v25 = vpop.permute.xlu1 %1573  ;;  %v1037_v4 = vadd.f32 %v3278_v10, %v504_v7  ;;  %v634_v19 = vadd.f32 %v3276_v36, %v504_v7 }
 0x2a2   :  { %v1612_v46 = vsub.f32 %v3272_v52, %v1574_v25  ;;  %1150 = vrot.lane.b32.xlu0 %v1114_v49, %s2152_s17  ;;  %v691_v25 = vsub.f32 %v626_v35, %v3298_v28  ;;  %v1091_v28 = vsub.f32 %v1026_v34, %v3286_v62  ;;  %v693_v49 = vsub.f32 %v628_v0, %v3345_v38  ;;  %v1588_v35 = vpop.permute.xlu0 %1587  ;;  %v4552_v34 = vld [vmem:[#allocation54_spill] sm:$0xff] }
 0x2a3   :  { %v623_v62 = vadd.f32 %v3065_v39, %v493_v8  ;;  %v632_v38 = vadd.f32 %v3265_v41, %v502_v22  ;;  %v699_v50 = vsub.f32 %v634_v19, %v3416_v31  ;;  %v629_v8 = vadd.f32 %v3114_v33, %v3361_v14 }
 0x2a4   :  { %v1625_v15 = vmul.f32 %v1612_v46, %v1612_v46  ;;  %v704_v1 = vadd.f32 1e-06, %v691_v25  ;;  %v1104_v46 = vadd.f32 1e-06, %v1091_v28  ;;  %v706_v2 = vadd.f32 1e-06, %v693_v49 }
 0x2a5   :  { %v688_v10 = vsub.f32 %v623_v62, %v3312_v48  ;;  %v627_v48 = vadd.f32 %v3094_v29, %v3343_v3  ;;  %v694_v31 = vsub.f32 %v629_v8, %v3354_v59  ;;  %v631_v3 = vadd.f32 %v3125_v26, %v3386_v30 }
 0x2a6   :  { %1651 = vrot.lane.b32.xlu1 %v1625_v15, %s2158_s7  ;;  %1154 = vrot.lane.b32.xlu0 %v1116_v63, %s2152_s17  ;;  %v1102_v63 = vsub.f32 %v1037_v4, %v3303_v12  ;;  %v697_v15 = vsub.f32 %v632_v38, %v3389_v27  ;;  %v625_v12 = vadd.f32 %v3083_v17, %v3326_v54  ;;  %v1592_v17 = vpop.permute.xlu0 %1591  ;;  %v712_v27 = vadd.f32 1e-06, %v699_v50  ;;  %v4553_v4 = vld [vmem:[#allocation57_spill] sm:$0xff] }
 0x2a7   :  { %v701_v39 = vadd.f32 1e-06, %v688_v10  ;;  %v692_v36 = vsub.f32 %v627_v48, %v3336_v57  ;;  %v707_v57 = vadd.f32 1e-06, %v694_v31  ;;  %v696_v33 = vsub.f32 %v631_v3, %v3375_v47 }
 0x2a8   :  { %v1115_v16 = vadd.f32 1e-06, %v1102_v63  ;;  %v690_v41 = vsub.f32 %v625_v12, %v3328_v21  ;;  %v710_v22 = vadd.f32 1e-06, %v697_v15  ;;  %v633_v14 = vadd.f32 %v3282_v42, %v3413_v24  ;;  %v4556_v15 = vld [vmem:[#allocation59_spill] sm:$0xff] }
 0x2a9   :  { %v705_v21 = vadd.f32 1e-06, %v692_v36  ;;  %v1616_v30 = vsub.f32 %v3213_v44, %v1582_v20  ;;  %v1617_v24 = vsub.f32 %v3231_v5, %v1584_v53  ;;  %v3529_v45 = vmul.f32 %v4552_v34, %v4552_v34 }
 0x2aa   :  { %1655 = vrot.lane.b32.xlu1 %v1627_v61, %s2158_s7  ;;  %729 = vrot.lane.b32.xlu0 %v702_v58, %s2152_s17  ;;  %v703_v54 = vadd.f32 1e-06, %v690_v41  ;;  %v3495_v29 = vpop.permute.xlu0 %1595  ;;  %v709_v58 = vadd.f32 1e-06, %v696_v33  ;;  %v698_v26 = vsub.f32 %v633_v14, %v3402_v6  ;;  %v1586_v61 = vpop.permute.xlu1 %1585  ;;  %v1619_v7 = vsub.f32 %v3371_v37, %v1588_v35 }
 0x2ab   :  { %v1629_v42 = vmul.f32 %v1616_v30, %v1616_v30  ;;  %v1630_v6 = vmul.f32 %v1617_v24, %v1617_v24  ;;  %v1618_v20 = vsub.f32 %v3320_v18, %v1586_v61  ;;  %v3546_v53 = vmul.f32 %v4553_v4, %v4553_v4 }
 0x2ac   :  { %v711_v47 = vadd.f32 1e-06, %v698_v26  ;;  %v1632_v51 = vmul.f32 %v1619_v7, %v1619_v7  ;;  %v3560_v62 = vmul.f32 %v3213_v44, %v3213_v44  ;;  %v1621_v38 = vsub.f32 %v3397_v11, %v1592_v17 }
 0x2ad   :  { %v1631_v28 = vmul.f32 %v1618_v20, %v1618_v20  ;;  %v3569_v10 = vmul.f32 %v3231_v5, %v3231_v5  ;;  %v635_v35 = vadd.f32 %v4556_v15, %v3428_v43  ;;  %v3578_v44 = vmul.f32 %v3320_v18, %v3320_v18 }
 0x2ae   :  { %1339 = vrot.lane.b32.xlu1 %v3371_v37, %s2157_s13  ;;  %733 = vrot.lane.b32.xlu0 %v704_v1, %s2152_s17  ;;  %v3508_v59 = vpop.permute.xlu0 %1327  ;;  %v3537_v1 = vmul.f32 %v3181_v9, %v3181_v9  ;;  %4554 = vst [vmem:[#allocation12_spill] sm:$0xff] %v3560_v62  ;;  %v1634_v12 = vmul.f32 %v1621_v38, %v1621_v38 }
 0x2af   :  { %4555 = vst [vmem:[#allocation15_spill] sm:$0xff] %v3569_v10  ;;  %4557 = vst [vmem:[#allocation14_spill] sm:$0xff] %v3578_v44  ;;  %v3589_v43 = vmul.f32 %v3382_v60, %v3382_v60  ;;  %v1623_v18 = vsub.f32 %v3459_v23, %v3495_v29  ;;  %v3606_v8 = vmul.f32 %v3424_v32, %v3424_v32 }
 0x2b0   :  { %v3616_v29 = vmul.f32 %v3371_v37, %v3371_v37 }
 0x2b1   :  { %4558 = vst [vmem:[#allocation17_spill] sm:$0xff] %v3589_v43  ;;  %v1636_v36 = vmul.f32 %v1623_v18, %v1623_v18  ;;  %4560 = vst [vmem:[#allocation19_spill] sm:$0xff] %v3606_v8 }
 0x2b2   :  { %1130 = vrot.lane.b32.xlu1 %v1104_v46, %s2152_s17  ;;  %737 = vrot.lane.b32.xlu0 %v706_v2, %s2152_s17  ;;  %v3515_v25 = vpop.permute.xlu0 %1329  ;;  %v1590_v46 = vpop.permute.xlu1 %1589  ;;  %4561 = vst [vmem:[#allocation18_spill] sm:$0xff] %v3616_v29 }
 0x2b3   :  { %v1620_v2 = vsub.f32 %v3382_v60, %v1590_v46 }
 0x2b6   :  { %1152 = vrot.lane.b32.xlu1 %v1115_v16, %s2152_s17  ;;  %741 = vrot.lane.b32.xlu0 %v708_v56, %s2152_s17  ;;  %v3525_v0 = vpop.permute.xlu0 %1331  ;;  %v1633_v16 = vmul.f32 %v1620_v2, %v1620_v2  ;;  %v1594_v19 = vpop.permute.xlu1 %1593 }
 0x2b7   :  { %v1622_v5 = vsub.f32 %v3409_v55, %v1594_v19 }
 0x2b9   :  { %v1635_v48 = vmul.f32 %v1622_v5, %v1622_v5 }
 0x2ba   :  { %727 = vrot.lane.b32.xlu1 %v701_v39, %s2152_s17  ;;  %745 = vrot.lane.b32.xlu0 %v710_v22, %s2152_s17  ;;  %v3539_v49 = vpop.permute.xlu0 %1333  ;;  %v700_v39 = vsub.f32 %v635_v35, %v3431_v40  ;;  %v3598_v40 = vmul.f32 %v3409_v55, %v3409_v55  ;;  %v1598_v17 = vpop.permute.xlu1 %1597 }
 0x2bc   :  { %v713_v22 = vadd.f32 1e-06, %v700_v39  ;;  %4559 = vst [vmem:[#allocation16_spill] sm:$0xff] %v3598_v40  ;;  %v4564_v39 = vld [vmem:[#allocation32_spill] sm:$0xff] }
 0x2be   :  { %731 = vrot.lane.b32.xlu1 %v703_v54, %s2152_s17  ;;  %749 = vrot.lane.b32.xlu0 %v712_v27, %s2152_s17  ;;  %v3549_v63 = vpop.permute.xlu0 %1335  ;;  %v1624_v27 = vsub.f32 %v3424_v32, %v1598_v17  ;;  %v3634_v26 = vpop.permute.xlu1 %1325  ;;  %v4565_v17 = vld [vmem:[#allocation34_spill] sm:$0xff] }
 0x2c2   :  { %735 = vrot.lane.b32.xlu1 %v705_v21, %s2152_s17  ;;  %1341 = vrot.lane.b32.xlu0 %v3382_v60, %s2157_s13  ;;  %v1637_v21 = vmul.f32 %v1624_v27, %v1624_v27 }
 0x2c6   :  { %739 = vrot.lane.b32.xlu1 %v707_v57, %s2152_s17  ;;  %1343 = vrot.lane.b32.xlu0 %v3397_v11, %s2157_s13  ;;  %v3628_v57 = vmul.f32 %v3459_v23, %v3459_v23 }
 0x2c8   :  { %4563 = vst [vmem:[#allocation20_spill] sm:$0xff] %v3628_v57 }
 0x2ca   :  { %743 = vrot.lane.b32.xlu1 %v709_v58, %s2152_s17  ;;  %1345 = vrot.lane.b32.xlu0 %v3409_v55, %s2157_s13 }
 0x2ce   :  { %747 = vrot.lane.b32.xlu1 %v711_v47, %s2152_s17  ;;  %1347 = vrot.lane.b32.xlu0 %v3459_v23, %s2157_s13 }
 0x2d2   :  { %1659 = vrot.lane.b32.xlu1 %v1629_v42, %s2158_s7  ;;  %1349 = vrot.lane.b32.xlu0 %v3424_v32, %s2157_s13  ;;  %v3622_v32 = vmul.f32 %v3397_v11, %v3397_v11 }
 0x2d4   :  { %4562 = vst [vmem:[#allocation21_spill] sm:$0xff] %v3622_v32 }
 0x2d6   :  { %1661 = vrot.lane.b32.xlu1 %v1630_v6, %s2158_s7  ;;  %1758 = vrot.lane.b32.xlu0 %v3529_v45, %s2157_s13 }
 0x2da   :  { %1663 = vrot.lane.b32.xlu1 %v1631_v28, %s2158_s7  ;;  %1760 = vrot.lane.b32.xlu0 %v3537_v1, %s2157_s13 }
 0x2de   :  { %1665 = vrot.lane.b32.xlu1 %v1632_v51, %s2158_s7  ;;  %1762 = vrot.lane.b32.xlu0 %v3546_v53, %s2157_s13 }
 0x2e2   :  { %1756 = vrot.lane.b32.xlu1 %v3554_v13, %s2157_s13  ;;  %1764 = vrot.lane.b32.xlu0 %v3560_v62, %s2157_s13 }
 0x2e4   :  { %v1654_v56 = vpop.permute.xlu0 %1653 }
 0x2e5   :  { %v1694_v46 = vsel %vm1690_vm0, %v1654_v56, 0.0 }
 0x2e6   :  { %1667 = vrot.lane.b32.xlu1 %v1633_v16, %s2158_s7  ;;  %1766 = vrot.lane.b32.xlu0 %v3569_v10, %s2157_s13 }
 0x2e8   :  { %v3581_v41 = vpop.permute.xlu0 %1337 }
 0x2ea   :  { %1669 = vrot.lane.b32.xlu1 %v1634_v12, %s2158_s7  ;;  %1768 = vrot.lane.b32.xlu0 %v3578_v44, %s2157_s13 }
 0x2ec   :  { %v1658_v50 = vpop.permute.xlu0 %1657 }
 0x2ed   :  { %v1700_v35 = vsel %vm1690_vm0, %v1658_v50, 0.0 }
 0x2ee   :  { %751 = vrot.lane.b32.xlu1 %v713_v22, %s2152_s17  ;;  %1772 = vrot.lane.b32.xlu0 %v3589_v43, %s2157_s13  ;;  %s2159_s17 = smov 124   ;;  %v4423_v22 = vmov 0   ;;  %v4591_v43 = vld [vmem:[#allocation50_spill] sm:$0xff] }
 0x2ef   :  { %2031 = vset.pattern.permute.xlu1 %v4423_v22  ;;  %2030 = vset.pattern.permute.xlu0 %v4423_v22 }
 0x2f0   :  { %v1133_v54 = vpop.permute.xlu0 %1132 }
 0x2f1   :  { %2032 = vrcp.f32 %v1133_v54 }
 0x2f2   :  { %1671 = vrot.lane.b32.xlu1 %v1635_v48, %s2158_s7  ;;  %1776 = vrot.lane.b32.xlu0 %v3598_v40, %s2157_s13  ;;  %v4588_v40 = vmov 0  }
 0x2f4   :  { %v3611_v31 = vpop.permute.xlu0 %1134 }
 0x2f6   :  { %1673 = vrot.lane.b32.xlu1 %v1636_v36, %s2158_s7  ;;  %1780 = vrot.lane.b32.xlu0 %v3606_v8, %s2157_s13 }
 0x2f8   :  { %v1137_v3 = vpop.permute.xlu0 %1136 }
 0x2f9   :  { %2034 = vrcp.f32 %v1137_v3 }
 0x2fa   :  { %1675 = vrot.lane.b32.xlu1 %v1637_v21, %s2158_s7  ;;  %v4566_v21 = vld [vmem:[#allocation37_spill] sm:$0xff] }
 0x2fb   :  { %v2033_v56 = vpop.eup %2032 }
 0x2fc   :  { %v3630_v33 = vpop.permute.xlu0 %1138  ;;  %v1172_v5 = vmul.f32 %v2033_v56, %v4564_v39  ;;  %v4568_v56 = vld [vmem:[#allocation42_spill] sm:$0xff] }
 0x2fe   :  { %1770 = vrot.lane.b32.xlu1 %v3616_v29, %s2157_s13 }
 0x300   :  { %v1141_v14 = vpop.permute.xlu0 %1140 }
 0x301   :  { %2036 = vrcp.f32 %v1141_v14 }
 0x302   :  { %1774 = vrot.lane.b32.xlu1 %v3622_v32, %s2157_s13 }
 0x303   :  { %v2035_v18 = vpop.eup %2034 }
 0x304   :  { %v1143_v58 = vpop.permute.xlu0 %1142  ;;  %v1176_v54 = vmul.f32 %v2035_v18, %v4565_v17 }
 0x305   :  { %2038 = vrcp.f32 %v1143_v58 }
 0x306   :  { %1778 = vrot.lane.b32.xlu1 %v3628_v57, %s2157_s13  ;;  %v4586_v57 = vld [vmem:[#allocation41_spill] sm:$0xff] }
 0x308   :  { %v3636_v30 = vpop.permute.xlu0 %1144 }
 0x30b   :  { %v2037_v36 = vpop.eup %2036 }
 0x30c   :  { %v1147_v24 = vpop.permute.xlu0 %1146  ;;  %v1180_v3 = vmul.f32 %v2037_v36, %v4566_v21 }
 0x30d   :  { %2040 = vrcp.f32 %v1147_v24 }
 0x30f   :  { %v2039_v14 = vpop.eup %2038 }
 0x310   :  { %v3641_v20 = vpop.permute.xlu0 %1148 }
 0x314   :  { %v3643_v28 = vpop.permute.xlu0 %1150 }
 0x318   :  { %v1652_v47 = vpop.permute.xlu1 %1651  ;;  %v3650_v38 = vpop.permute.xlu0 %1154 }
 0x319   :  { %v1691_v42 = vsel %vm1690_vm0, %v1652_v47, 0.0 }
 0x31a   :  { %1692 = vadd.xlane.f32.xlu0 %v1691_v42  ;;  %v4567_v42 = vld [vmem:[#allocation38_spill] sm:$0xff] }
 0x31b   :  { %v1182_v24 = vmul.f32 %v2039_v14, %v4567_v42 }
 0x31c   :  { %v1656_v61 = vpop.permute.xlu1 %1655  ;;  %v3658_v12 = vpop.permute.xlu0 %729 }
 0x31d   :  { %v1697_v16 = vsel %vm1690_vm0, %v1656_v61, 0.0  ;;  %v2041_v61 = vpop.eup %2040 }
 0x31e   :  { %v1186_v39 = vmul.f32 %v2041_v61, %v4568_v56 }
 0x320   :  { %v3639_v6 = vpop.permute.xlu1 %1339  ;;  %v3670_v48 = vpop.permute.xlu0 %733 }
 0x324   :  { %v1131_v7 = vpop.permute.xlu1 %1130  ;;  %v3677_v58 = vpop.permute.xlu0 %737 }
 0x325   :  { %2042 = vrcp.f32 %v1131_v7  ;;  %v4569_v7 = vld [vmem:[#allocation35_spill] sm:$0xff] }
 0x326   :  { %2044 = vrcp.f32 %v3611_v31  ;;  %v4570_v31 = vld [vmem:[#allocation33_spill] sm:$0xff] }
 0x327   :  { %2046 = vrcp.f32 %v3630_v33 }
 0x328   :  { %v3645_v51 = vpop.permute.xlu1 %1152  ;;  %2048 = vrcp.f32 %v3636_v30 }
 0x329   :  { %2050 = vrcp.f32 %v3641_v20  ;;  %v4573_v20 = vld [vmem:[#allocation44_spill] sm:$0xff] }
 0x32a   :  { %1695 = vadd.xlane.f32.xlu1 %v1694_v46  ;;  %2052 = vrcp.f32 %v3643_v28  ;;  %v4574_v28 = vld [vmem:[#allocation45_spill] sm:$0xff] }
 0x32b   :  { %2054 = vrcp.f32 %v3645_v51  ;;  %v4575_v51 = vld [vmem:[#allocation46_spill] sm:$0xff] }
 0x32c   :  { %v3648_v2 = vpop.permute.xlu1 %727  ;;  %2056 = vrcp.f32 %v3650_v38 }
 0x32d   :  { %2058 = vrcp.f32 %v3658_v12 }
 0x32e   :  { %1698 = vadd.xlane.f32.xlu1 %v1697_v16  ;;  %v3684_v16 = vpop.permute.xlu0 %741  ;;  %2060 = vrcp.f32 %v3670_v48 }
 0x32f   :  { %2062 = vrcp.f32 %v3677_v58 }
 0x330   :  { %v3653_v15 = vpop.permute.xlu1 %731  ;;  %1377 = vrot.lane.b32.xlu0 %v3272_v52, %s2159_s17 }
 0x332   :  { %1701 = vadd.xlane.f32.xlu1 %v1700_v35 }
 0x334   :  { %v3660_v19 = vpop.permute.xlu1 %735  ;;  %1418 = vrot.lane.b32.xlu0 %v4552_v34, %s2160_s24 }
 0x338   :  { %v3667_v50 = vpop.permute.xlu1 %739  ;;  %1210 = vrot.lane.b32.xlu0 %v1172_v5, %s2157_s13  ;;  %v3689_v5 = vpop.permute.xlu0 %745 }
 0x339   :  { %2064 = vrcp.f32 %v3667_v50 }
 0x33c   :  { %v3673_v27 = vpop.permute.xlu1 %743  ;;  %1214 = vrot.lane.b32.xlu0 %v1176_v54, %s2157_s13  ;;  %v3691_v18 = vpop.permute.xlu0 %749 }
 0x33d   :  { %v2043_v54 = vpop.eup %2042  ;;  %2066 = vrcp.f32 %v3673_v27 }
 0x33e   :  { %v1170_v21 = vmul.f32 %v2043_v54, %v4569_v7  ;;  %2068 = vrcp.f32 %v3648_v2 }
 0x33f   :  { %2070 = vrcp.f32 %v3653_v15 }
 0x340   :  { %v3679_v47 = vpop.permute.xlu1 %747  ;;  %1218 = vrot.lane.b32.xlu0 %v1180_v3, %s2157_s13  ;;  %v3694_v17 = vpop.permute.xlu0 %1341  ;;  %2072 = vrcp.f32 %v3660_v19 }
 0x341   :  { %v2045_v3 = vpop.eup %2044  ;;  %2074 = vrcp.f32 %v3684_v16 }
 0x342   :  { %v1174_v14 = vmul.f32 %v2045_v3, %v4570_v31  ;;  %2076 = vrcp.f32 %v3689_v5  ;;  %v4607_v5 = vld [vmem:[#allocation52_spill] sm:$0xff] }
 0x344   :  { %v1660_v46 = vpop.permute.xlu1 %1659  ;;  %1220 = vrot.lane.b32.xlu0 %v1182_v24, %s2157_s13  ;;  %v3701_v36 = vpop.permute.xlu0 %1343  ;;  %v4571_v24 = vld [vmem:[#allocation36_spill] sm:$0xff] }
 0x345   :  { %v1703_v35 = vsel %vm1690_vm0, %v1660_v46, 0.0 }
 0x346   :  { %1704 = vadd.xlane.f32.xlu1 %v1703_v35  ;;  %v4572_v35 = vld [vmem:[#allocation39_spill] sm:$0xff] }
 0x348   :  { %1224 = vrot.lane.b32.xlu0 %v1186_v39, %s2157_s13  ;;  %v3707_v42 = vpop.permute.xlu0 %1345  ;;  %v1662_v33 = vpop.permute.xlu1 %1661 }
 0x349   :  { %v1706_v46 = vsel %vm1690_vm0, %v1662_v33, 0.0 }
 0x34c   :  { %v3713_v30 = vpop.permute.xlu0 %1347 }
 0x350   :  { %v3719_v39 = vpop.permute.xlu0 %1349 }
 0x354   :  { %v3726_v7 = vpop.permute.xlu0 %1758 }
 0x357   :  { %1379 = vrot.lane.b32.xlu1 %v4552_v34, %s2159_s17  ;;  %v2047_v34 = vpop.eup %2046  ;;  %2078 = vrcp.f32 %v3679_v47 }
 0x358   :  { %v1178_v61 = vmul.f32 %v2047_v34, %v4571_v24 }
 0x35b   :  { %1416 = vrot.lane.b32.xlu1 %v3272_v52, %s2160_s24  ;;  %v2049_v52 = vpop.eup %2048  ;;  %2080 = vrcp.f32 %v3691_v18 }
 0x35c   :  { %v1184_v56 = vmul.f32 %v2049_v52, %v4572_v35  ;;  %v2051_v54 = vpop.eup %2050  ;;  %v4576_v52 = vld [vmem:[#allocation40_spill] sm:$0xff] }
 0x35d   :  { %v2053_v3 = vpop.eup %2052 }
 0x35e   :  { %v1190_v31 = vmul.f32 %v2053_v3, %v4574_v28  ;;  %v2055_v34 = vpop.eup %2054 }
 0x35f   :  { %1208 = vrot.lane.b32.xlu1 %v1170_v21, %s2157_s13  ;;  %v1188_v21 = vmul.f32 %v2051_v54, %v4573_v20  ;;  %v1192_v33 = vmul.f32 %v2055_v34, %v4575_v51  ;;  %v2057_v24 = vpop.eup %2056 }
 0x363   :  { %1212 = vrot.lane.b32.xlu1 %v1174_v14, %s2157_s13  ;;  %v3732_v14 = vpop.permute.xlu0 %1760 }
 0x367   :  { %1216 = vrot.lane.b32.xlu1 %v1178_v61, %s2157_s13  ;;  %1707 = vadd.xlane.f32.xlu0 %v1706_v46  ;;  %v3739_v38 = vpop.permute.xlu0 %1762  ;;  %v1664_v61 = vpop.permute.xlu1 %1663  ;;  %v1194_v46 = vmul.f32 %v2057_v24, %v4576_v52 }
 0x36b   :  { %1222 = vrot.lane.b32.xlu1 %v1184_v56, %s2157_s13  ;;  %v3743_v35 = vpop.permute.xlu0 %1764  ;;  %v3745_v56 = vpop.permute.xlu1 %1665 }
 0x36c   :  { %4577 = vst [vmem:[#allocation8_spill] sm:$0xff] %v3743_v35 }
 0x36f   :  { %1420 = vrot.lane.b32.xlu1 %v3181_v9, %s2160_s24  ;;  %v3747_v54 = vpop.permute.xlu0 %1766  ;;  %v3749_v20 = vpop.permute.xlu1 %1756 }
 0x370   :  { %4578 = vst [vmem:[#allocation6_spill] sm:$0xff] %v3747_v54 }
 0x373   :  { %1422 = vrot.lane.b32.xlu1 %v4553_v4, %s2160_s24 }
 0x377   :  { %1226 = vrot.lane.b32.xlu1 %v1188_v21, %s2157_s13  ;;  %v3753_v21 = vpop.permute.xlu1 %1667 }
 0x37b   :  { %1228 = vrot.lane.b32.xlu1 %v1190_v31, %s2157_s13  ;;  %v3757_v28 = vpop.permute.xlu1 %1669  ;;  %v1709_v31 = vsel %vm1690_vm0, %v1664_v61, 0.0 }
 0x37d   :  { %1381 = vrot.lane.b32.xlu0 %v3181_v9, %s2159_s17  ;;  %v3751_v9 = vpop.permute.xlu0 %1768 }
 0x37e   :  { %4579 = vst [vmem:[#allocation13_spill] sm:$0xff] %v3751_v9 }
 0x37f   :  { %1230 = vrot.lane.b32.xlu1 %v1192_v33, %s2157_s13  ;;  %v3762_v51 = vpop.permute.xlu1 %751 }
 0x380   :  { %2082 = vrcp.f32 %v3762_v51 }
 0x381   :  { %v3755_v3 = vpop.permute.xlu0 %1772 }
 0x382   :  { %4580 = vst [vmem:[#allocation7_spill] sm:$0xff] %v3755_v3  ;;  %v4589_v3 = vld [vmem:[#allocation43_spill] sm:$0xff] }
 0x383   :  { %1232 = vrot.lane.b32.xlu1 %v1194_v46, %s2157_s13  ;;  %v3764_v33 = vpop.permute.xlu1 %1671 }
 0x385   :  { %v3760_v34 = vpop.permute.xlu0 %1776 }
 0x386   :  { %4581 = vst [vmem:[#allocation54_spill] sm:$0xff] %v3760_v34 }
 0x387   :  { %v3772_v46 = vpop.permute.xlu1 %1673 }
 0x388   :  { %4584 = vst [vmem:[#allocation32_spill] sm:$0xff] %v3772_v46 }
 0x389   :  { %v3766_v24 = vpop.permute.xlu0 %1780 }
 0x38a   :  { %4582 = vst [vmem:[#allocation57_spill] sm:$0xff] %v3766_v24 }
 0x38b   :  { %v3775_v61 = vpop.permute.xlu1 %1675 }
 0x38c   :  { %4585 = vst [vmem:[#allocation34_spill] sm:$0xff] %v3775_v61 }
 0x38f   :  { %v3781_v24 = vpop.permute.xlu1 %1770 }
 0x390   :  { %4587 = vst [vmem:[#allocation37_spill] sm:$0xff] %v3781_v24  ;;  %v4593_v24 = vld [vmem:[#allocation51_spill] sm:$0xff] }
 0x39c   :  { %1710 = vadd.xlane.f32.xlu0 %v1709_v31  ;;  %v2059_v31 = vpop.eup %2058 }
 0x39d   :  { %v769_v34 = vmul.f32 %v2059_v31, %v4586_v57  ;;  %v2061_v12 = vpop.eup %2060 }
 0x39e   :  { %v3788_v50 = vmul.f32 %v2061_v12, %v4589_v3  ;;  %v2063_v57 = vpop.eup %2062 }
 0x39f   :  { %v2065_v3 = vpop.eup %2064 }
 0x3a0   :  { %v3818_v29 = vmul.f32 %v2065_v3, %v4593_v24  ;;  %v2067_v9 = vpop.eup %2066 }
 0x3a1   :  { %v2069_v61 = vpop.eup %2068 }
 0x3a7   :  { %v3769_v52 = vpop.xlane.xlu0 %1692 }
 0x3a8   :  { %4583 = vst [vmem:[#allocation59_spill] sm:$0xff] %v3769_v52  ;;  %v4596_v52 = vld [vmem:[#allocation53_spill] sm:$0xff] }
 0x3ab   :  { %v1378_v22 = vpop.permute.xlu0 %1377 }
 0x3af   :  { %v1419_v8 = vpop.permute.xlu0 %1418 }
 0x3b2   :  { %1383 = vrot.lane.b32.xlu0 %v4553_v4, %s2159_s17  ;;  %v3794_v4 = vpop.permute.xlu1 %1774 }
 0x3b3   :  { %v1211_v48 = vpop.permute.xlu0 %1210  ;;  %4590 = vst [vmem:[#allocation38_spill] sm:$0xff] %v3794_v4 }
 0x3b4   :  { %vm1248_vm1 = vcmp.gt.f32.partialorder %v769_v34, %v1211_v48 }
 0x3b5   :  { %v1469_v58 = vsel %vm1248_vm1, %v769_v34, %v1211_v48  ;;  %v1261_v32 = vsel %vm1248_vm1, 1, %v4588_v40 }
 0x3b6   :  { %1277 = vperm.xlu1 %2031, %v1261_v32   ;;  %v3804_v32 = vmul.f32 %v2063_v57, %v4591_v43  ;;  %v3820_v44 = vpop.permute.xlu1 %1778 }
 0x3b7   :  { %v3790_v31 = vpop.permute.xlu0 %1214  ;;  %4594 = vst [vmem:[#allocation35_spill] sm:$0xff] %v3820_v44 }
 0x3b8   :  { %vm1250_vm2 = vcmp.gt.f32.partialorder %v3788_v50, %v3790_v31 }
 0x3b9   :  { %v3801_v27 = vsel %vm1250_vm2, %v3788_v50, %v3790_v31 }
 0x3ba   :  { %v3836_v24 = vpop.xlane.xlu1 %1695 }
 0x3bb   :  { %v3806_v12 = vpop.permute.xlu0 %1218  ;;  %4598 = vst [vmem:[#allocation39_spill] sm:$0xff] %v3836_v24 }
 0x3bc   :  { %vm1252_vm3 = vcmp.gt.f32.partialorder %v3804_v32, %v3806_v12 }
 0x3bd   :  { %v3815_v4 = vsel %vm1252_vm3, %v3804_v32, %v3806_v12 }
 0x3be   :  { %4592 = vst [vmem:[#allocation42_spill] sm:$0xff] %v3815_v4  ;;  %v3834_v4 = vmul.f32 %v2067_v9, %v4596_v52  ;;  %v3849_v54 = vpop.xlane.xlu1 %1698 }
 0x3bf   :  { %v3822_v43 = vpop.permute.xlu0 %1220  ;;  %4601 = vst [vmem:[#allocation46_spill] sm:$0xff] %v3849_v54 }
 0x3c0   :  { %vm1253_vm4 = vcmp.gt.f32.partialorder %v3818_v29, %v3822_v43  ;;  %4597 = vst [vmem:[#allocation36_spill] sm:$0xff] %v3834_v4 }
 0x3c1   :  { %v3831_v57 = vsel %vm1253_vm4, %v3818_v29, %v3822_v43 }
 0x3c2   :  { %4595 = vst [vmem:[#allocation33_spill] sm:$0xff] %v3831_v57  ;;  %v3851_v57 = vpop.xlane.xlu1 %1701 }
 0x3c3   :  { %v3838_v3 = vpop.permute.xlu0 %1224  ;;  %4602 = vst [vmem:[#allocation40_spill] sm:$0xff] %v3851_v57  ;;  %v2071_v57 = vpop.eup %2070 }
 0x3c4   :  { %4599 = vst [vmem:[#allocation44_spill] sm:$0xff] %v3838_v3  ;;  %vm1255_vm5 = vcmp.gt.f32.partialorder %v3834_v4, %v3838_v3  ;;  %v2073_v34 = vpop.eup %2072 }
 0x3c5   :  { %v3847_v44 = vsel %vm1255_vm5, %v3834_v4, %v3838_v3 }
 0x3c6   :  { %4600 = vst [vmem:[#allocation45_spill] sm:$0xff] %v3847_v44  ;;  %v4604_v44 = vld [vmem:[#allocation47_spill] sm:$0xff] }
 0x3c7   :  { %v767_v54 = vmul.f32 %v2069_v61, %v4604_v44 }
 0x3d3   :  { %v3854_v9 = vpop.xlane.xlu1 %1704 }
 0x3d4   :  { %4603 = vst [vmem:[#allocation41_spill] sm:$0xff] %v3854_v9 }
 0x3d7   :  { %v1380_v52 = vpop.permute.xlu1 %1379 }
 0x3d8   :  { %v1456_v24 = vsel %vm1248_vm1, %v1380_v52, %v1419_v8  ;;  %v4605_v8 = vld [vmem:[#allocation48_spill] sm:$0xff] }
 0x3d9   :  { %v3859_v10 = vsub.f32 %v1456_v24, %v1469_v58  ;;  %v771_v19 = vmul.f32 %v2071_v57, %v4605_v8  ;;  %v1265_v24 = vsel %vm1252_vm3, 1, %v4588_v40 }
 0x3db   :  { %v1417_v35 = vpop.permute.xlu1 %1416 }
 0x3df   :  { %v1209_v62 = vpop.permute.xlu1 %1208 }
 0x3e0   :  { %vm1247_vm6 = vcmp.gt.f32.partialorder %v767_v54, %v1209_v62 }
 0x3e1   :  { %v1455_v2 = vsel %vm1247_vm6, %v1378_v22, %v1417_v35  ;;  %v1468_v9 = vsel %vm1247_vm6, %v767_v54, %v1209_v62  ;;  %v1260_v15 = vsel %vm1247_vm6, 1, %v4588_v40  ;;  %v1263_v62 = vsel %vm1250_vm2, 1, %v4588_v40  ;;  %v4606_v22 = vld [vmem:[#allocation49_spill] sm:$0xff]  ;;  %v2075_v35 = vpop.eup %2074 }
 0x3e2   :  { %v3864_v46 = vsub.f32 %v1455_v2, %v1468_v9  ;;  %1274 = vperm.xlu0 %2030, %v1260_v15   ;;  %v3875_v16 = vmul.f32 %v2073_v34, %v4606_v22  ;;  %v3898_v9 = vmul.f32 %v2075_v35, %v4607_v5  ;;  %v1266_v15 = vsel %vm1253_vm4, 1, %v4588_v40  ;;  %v2077_v34 = vpop.eup %2076  ;;  %v4608_v35 = vld [vmem:[#allocation55_spill] sm:$0xff] }
 0x3e3   :  { %v1213_v48 = vpop.permute.xlu1 %1212  ;;  %v1268_v22 = vsel %vm1255_vm5, 1, %v4588_v40  ;;  %v3929_v18 = vmul.f32 %v2077_v34, %v4608_v35 }
 0x3e4   :  { %vm1249_vm7 = vcmp.gt.f32.partialorder %v771_v19, %v1213_v48 }
 0x3e5   :  { %v1470_v58 = vsel %vm1249_vm7, %v771_v19, %v1213_v48  ;;  %v1262_v44 = vsel %vm1249_vm7, 1, %v4588_v40 }
 0x3e6   :  { %1280 = vperm.xlu1 %2031, %v1262_v44   ;;  %1283 = vperm.xlu0 %2030, %v1263_v62  }
 0x3e7   :  { %v3877_v54 = vpop.permute.xlu1 %1216 }
 0x3e8   :  { %vm1251_vm8 = vcmp.gt.f32.partialorder %v3875_v16, %v3877_v54 }
 0x3e9   :  { %v3887_v61 = vsel %vm1251_vm8, %v3875_v16, %v3877_v54  ;;  %v1264_v57 = vsel %vm1251_vm8, 1, %v4588_v40  ;;  %v4102_v54 = vld [vmem:[%s4344_s0 + $0x60] sm:$0xff] }
 0x3ea   :  { %1286 = vperm.xlu1 %2031, %v1264_v57   ;;  %1289 = vperm.xlu0 %2030, %v1265_v24   ;;  %v2079_v57 = vpop.eup %2078 }
 0x3eb   :  { %v3900_v52 = vpop.permute.xlu1 %1222  ;;  %v2081_v3 = vpop.eup %2080 }
 0x3ec   :  { %vm1254_vm9 = vcmp.gt.f32.partialorder %v3898_v9, %v3900_v52 }
 0x3ed   :  { %v3910_v2 = vsel %vm1254_vm9, %v3898_v9, %v3900_v52  ;;  %v1267_v47 = vsel %vm1254_vm9, 1, %v4588_v40 }
 0x3ee   :  { %1292 = vperm.xlu1 %2031, %v1266_v15  }
 0x3ef   :  { %v1421_v8 = vpop.permute.xlu1 %1420 }
 0x3f2   :  { %1295 = vperm.xlu1 %2031, %v1267_v47  }
 0x3f3   :  { %v1423_v44 = vpop.permute.xlu1 %1422 }
 0x3f4   :  { %v3921_v62 = vpop.xlane.xlu0 %1707 }
 0x3f6   :  { %1298 = vperm.xlu1 %2031, %v1268_v22   ;;  %v4609_v22 = vld [vmem:[#allocation56_spill] sm:$0xff] }
 0x3f7   :  { %v3931_v24 = vpop.permute.xlu1 %1226  ;;  %v3950_v35 = vmul.f32 %v2079_v57, %v4609_v22  ;;  %v2083_v57 = vpop.eup %2082  ;;  %v4615_v22 = vld [vmem:[#allocation5_spill] sm:$0xff] }
 0x3f8   :  { %vm1256_vm10 = vcmp.gt.f32.partialorder %v3929_v18, %v3931_v24  ;;  %v1382_v5 = vpop.permute.xlu0 %1381 }
 0x3f9   :  { %v3940_v51 = vsel %vm1256_vm10, %v3929_v18, %v3931_v24  ;;  %v1457_v15 = vsel %vm1249_vm7, %v1382_v5, %v1421_v8  ;;  %v1269_v47 = vsel %vm1256_vm10, 1, %v4588_v40 }
 0x3fa   :  { %v3947_v34 = vsub.f32 %v1457_v15, %v1470_v58  ;;  %1301 = vperm.xlu1 %2031, %v1269_v47   ;;  %v4611_v58 = vld [vmem:[#allocation58_spill] sm:$0xff] }
 0x3fb   :  { %v3952_v4 = vpop.permute.xlu1 %1228  ;;  %v3968_v8 = vmul.f32 %v2081_v3, %v4611_v58  ;;  %v2102_v3 = vld [vmem:[%s4344_s0 + $0x20] sm:$0xff] }
 0x3fc   :  { %vm1257_vm11 = vcmp.gt.f32.partialorder %v3950_v35, %v3952_v4 }
 0x3fd   :  { %v3961_v19 = vsel %vm1257_vm11, %v3950_v35, %v3952_v4  ;;  %v1270_v48 = vsel %vm1257_vm11, 1, %v4588_v40  ;;  %4612 = vst [vmem:[#allocation50_spill] sm:$0xff] %v3968_v8 }
 0x3fe   :  { %4610 = vst [vmem:[#allocation43_spill] sm:$0xff] %v3961_v19  ;;  %1304 = vperm.xlu1 %2031, %v1270_v48   ;;  %v3990_v48 = vmul.f32 %v2083_v57, %v4615_v22  ;;  %v1712_v57 = vsel %vm1690_vm0, %v3745_v56, 0.0 }
 0x3ff   :  { %v3970_v5 = vpop.permute.xlu1 %1230 }
 0x400   :  { %4613 = vst [vmem:[#allocation51_spill] sm:$0xff] %v3970_v5  ;;  %vm1258_vm12 = vcmp.gt.f32.partialorder %v3968_v8, %v3970_v5 }
 0x401   :  { %v3979_v15 = vsel %vm1258_vm12, %v3968_v8, %v3970_v5  ;;  %v1271_v47 = vsel %vm1258_vm12, 1, %v4588_v40 }
 0x402   :  { %4614 = vst [vmem:[#allocation53_spill] sm:$0xff] %v3979_v15  ;;  %1307 = vperm.xlu0 %2030, %v1271_v47   ;;  %1424 = vrot.lane.b32.xlu1 %v2102_v3, %s2160_s24 }
 0x403   :  { %v3992_v58 = vpop.permute.xlu1 %1232 }
 0x404   :  { %4616 = vst [vmem:[#allocation47_spill] sm:$0xff] %v3992_v58  ;;  %vm1259_vm13 = vcmp.gt.f32.partialorder %v3990_v48, %v3992_v58 }
 0x405   :  { %v4001_v47 = vsel %vm1259_vm13, %v3990_v48, %v3992_v58  ;;  %v1272_v15 = vsel %vm1259_vm13, 1, %v4588_v40  ;;  %v2103_v40 = vld [vmem:[%s4344_s0 + $0x8] sm:$0xff]  ;;  %v1715_v58 = vsel %vm1690_vm0, %v3753_v21, 0.0 }
 0x406   :  { %4617 = vst [vmem:[#allocation48_spill] sm:$0xff] %v4001_v47  ;;  %1310 = vperm.xlu1 %2031, %v1272_v15   ;;  %v4618_v15 = vld [vmem:[#allocation11_spill] sm:$0xff] }
 0x421   :  { %1713 = vadd.xlane.f32.xlu0 %v1712_v57 }
 0x429   :  { %v4009_v22 = vpop.xlane.xlu0 %1710 }
 0x42d   :  { %v1384_v5 = vpop.permute.xlu0 %1383 }
 0x42e   :  { %v1458_v8 = vsel %vm1250_vm2, %v1384_v5, %v1423_v44  ;;  %v2104_v44 = vld [vmem:[%s4344_s0] sm:$0xff] }
 0x42f   :  { %v4015_v19 = vsub.f32 %v1458_v8, %v3801_v27 }
 0x435   :  { %v1278_v47 = vpop.permute.xlu1 %1277 }
 0x436   :  { %vm1313_vm14 = vcmp.eq.s32.totalorder %v1278_v47, 1 }
 0x437   :  { %1385 = vrot.lane.b32.xlu0 %v2102_v3, %s2159_s17  ;;  %v1365_v56 = vsel %vm1313_vm14, %v2103_v40, %v3508_v59  ;;  %v4619_v59 = vld [vmem:[#allocation9_spill] sm:$0xff] }
 0x438   :  { %v1482_v57 = vsub.f32 %v1365_v56, %v4618_v15  ;;  %v2106_v15 = vld [vmem:[%s4344_s0 + $0x18] sm:$0xff] }
 0x43a   :  { %v1495_v50 = vmul.f32 %v1482_v57, %v1482_v57 }
 0x43c   :  { %v1511_v31 = vsel %vm1507_vm15, %v1495_v50, 0.0 }
 0x456   :  { %1716 = vadd.xlane.f32.xlu0 %v1715_v58  ;;  %v2105_v58 = vld [vmem:[%s4344_s0 + $0x10] sm:$0xff] }
 0x45a   :  { %1512 = vadd.xlane.f32.xlu0 %v1511_v31  ;;  %v4621_v31 = vld [vmem:[#allocation22_spill] sm:$0xff] }
 0x461   :  { %v1275_v27 = vpop.permute.xlu0 %1274 }
 0x462   :  { %vm1312_vm1 = vcmp.eq.s32.totalorder %v1275_v27, 1 }
 0x463   :  { %v1364_v8 = vsel %vm1312_vm1, %v2104_v44, %v3634_v26  ;;  %v4620_v26 = vld [vmem:[#allocation10_spill] sm:$0xff] }
 0x464   :  { %v1481_v5 = vsub.f32 %v1364_v8, %v4619_v59 }
 0x465   :  { %v1281_v47 = vpop.permute.xlu1 %1280  ;;  %v1284_v40 = vpop.permute.xlu0 %1283 }
 0x466   :  { %vm1314_vm2 = vcmp.eq.s32.totalorder %v1281_v47, 1  ;;  %vm1315_vm6 = vcmp.eq.s32.totalorder %v1284_v40, 1  ;;  %v1494_v21 = vmul.f32 %v1481_v5, %v1481_v5  ;;  %v2107_v40 = vld [vmem:[%s4344_s0 + $0x28] sm:$0xff] }
 0x467   :  { %v1366_v56 = vsel %vm1314_vm2, %v2105_v58, %v3515_v25  ;;  %v1367_v57 = vsel %vm1315_vm6, %v2106_v15, %v3525_v0  ;;  %v4622_v58 = vld [vmem:[#allocation23_spill] sm:$0xff]  ;;  %v4623_v15 = vld [vmem:[#allocation24_spill] sm:$0xff] }
 0x468   :  { %v1483_v50 = vsub.f32 %v1366_v56, %v4620_v26  ;;  %v1484_v27 = vsub.f32 %v1367_v57, %v4621_v31  ;;  %v1508_v44 = vsel %vm1507_vm15, %v1494_v21, 0.0 }
 0x469   :  { %v1287_v8 = vpop.permute.xlu1 %1286  ;;  %1509 = vadd.xlane.f32.xlu1 %v1508_v44  ;;  %v1290_v59 = vpop.permute.xlu0 %1289 }
 0x46a   :  { %vm1316_vm7 = vcmp.eq.s32.totalorder %v1287_v8, 1  ;;  %vm1317_vm14 = vcmp.eq.s32.totalorder %v1290_v59, 1  ;;  %v1496_v5 = vmul.f32 %v1483_v50, %v1483_v50  ;;  %v1497_v47 = vmul.f32 %v1484_v27, %v1484_v27 }
 0x46b   :  { %v1368_v25 = vsel %vm1316_vm7, %v2102_v3, %v3539_v49  ;;  %v1369_v0 = vsel %vm1317_vm14, %v2107_v40, %v3549_v63  ;;  %v2108_v49 = vld [vmem:[%s4344_s0 + $0x30] sm:$0xff]  ;;  %v4624_v63 = vld [vmem:[#allocation25_spill] sm:$0xff] }
 0x46c   :  { %v1485_v56 = vsub.f32 %v1368_v25, %v4622_v58  ;;  %v1486_v57 = vsub.f32 %v1369_v0, %v4623_v15  ;;  %v1514_v21 = vsel %vm1507_vm15, %v1496_v5, 0.0  ;;  %v1517_v26 = vsel %vm1507_vm15, %v1497_v47, 0.0 }
 0x46d   :  { %1515 = vadd.xlane.f32.xlu0 %v1514_v21  ;;  %v1293_v31 = vpop.permute.xlu1 %1292  ;;  %1518 = vadd.xlane.f32.xlu1 %v1517_v26  ;;  %v4626_v26 = vld [vmem:[#allocation27_spill] sm:$0xff] }
 0x46e   :  { %vm1318_vm1 = vcmp.eq.s32.totalorder %v1293_v31, 1  ;;  %v1498_v50 = vmul.f32 %v1485_v56, %v1485_v56  ;;  %v1499_v8 = vmul.f32 %v1486_v57, %v1486_v57  ;;  %v4625_v56 = vld [vmem:[#allocation26_spill] sm:$0xff] }
 0x46f   :  { %v1370_v3 = vsel %vm1318_vm1, %v2108_v49, %v3581_v41 }
 0x470   :  { %v1487_v27 = vsub.f32 %v1370_v3, %v4624_v63  ;;  %v1520_v44 = vsel %vm1507_vm15, %v1498_v50, 0.0  ;;  %v1523_v59 = vsel %vm1507_vm15, %v1499_v8, 0.0  ;;  %v4627_v63 = vld [vmem:[#allocation28_spill] sm:$0xff] }
 0x471   :  { %1521 = vadd.xlane.f32.xlu0 %v1520_v44  ;;  %v1296_v25 = vpop.permute.xlu1 %1295 }
 0x472   :  { %v1500_v5 = vmul.f32 %v1487_v27, %v1487_v27  ;;  %vm1319_vm2 = vcmp.eq.s32.totalorder %v1296_v25, 1 }
 0x473   :  { %v1371_v41 = vsel %vm1319_vm2, %v3371_v37, %v3639_v6 }
 0x474   :  { %v1526_v47 = vsel %vm1507_vm15, %v1500_v5, 0.0  ;;  %v1488_v15 = vsub.f32 %v1371_v41, %v4625_v56 }
 0x475   :  { %1524 = vadd.xlane.f32.xlu0 %v1523_v59  ;;  %v1299_v0 = vpop.permute.xlu1 %1298 }
 0x476   :  { %vm1320_vm6 = vcmp.eq.s32.totalorder %v1299_v0, 1  ;;  %v1501_v50 = vmul.f32 %v1488_v15, %v1488_v15 }
 0x477   :  { %v1372_v57 = vsel %vm1320_vm6, %v3382_v60, %v3694_v17  ;;  %v4628_v60 = vld [vmem:[#allocation29_spill] sm:$0xff] }
 0x478   :  { %v1489_v31 = vsub.f32 %v1372_v57, %v4626_v26  ;;  %v1529_v37 = vsel %vm1507_vm15, %v1501_v50, 0.0  ;;  %v1795_v57 = vadd.f32 %v3749_v20, %v3554_v13  ;;  %v4630_v13 = vld [vmem:[#allocation31_spill] sm:$0xff]  ;;  %v1721_v20 = vsel %vm1690_vm0, %v3764_v33, 0.0 }
 0x479   :  { %1527 = vadd.xlane.f32.xlu0 %v1526_v47  ;;  %v1302_v58 = vpop.permute.xlu1 %1301  ;;  %v1797_v50 = vadd.f32 %v3732_v14, %v3537_v1  ;;  %v1798_v1 = vadd.f32 %v3739_v38, %v3546_v53 }
 0x47a   :  { %vm1321_vm7 = vcmp.eq.s32.totalorder %v1302_v58, 1  ;;  %v1502_v6 = vmul.f32 %v1489_v31, %v1489_v31  ;;  %v1873_v26 = vmul.f32 0.5, %v1795_v57  ;;  %v2112_v57 = vld [vmem:[%s4344_s0 + $0x48] sm:$0xff] }
 0x47b   :  { %v1876_v14 = vmul.f32 0.5, %v1798_v1 }
 0x47c   :  { %v1532_v8 = vsel %vm1507_vm15, %v1502_v6, 0.0  ;;  %v2110_v6 = vld [vmem:[%s4344_s0 + $0x38] sm:$0xff] }
 0x47d   :  { %v1305_v21 = vpop.permute.xlu1 %1304 }
 0x47e   :  { %1426 = vrot.lane.b32.xlu1 %v2107_v40, %s2160_s24  ;;  %vm1322_vm14 = vcmp.eq.s32.totalorder %v1305_v21, 1 }
 0x47f   :  { %v1374_v44 = vsel %vm1322_vm14, %v3409_v55, %v3707_v42  ;;  %v1718_v55 = vsel %vm1690_vm0, %v3757_v28, 0.0  ;;  %v1796_v28 = vadd.f32 %v3726_v7, %v3529_v45 }
 0x480   :  { %v1491_v17 = vsub.f32 %v1374_v44, %v4628_v60 }
 0x481   :  { %v1308_v3 = vpop.permute.xlu0 %1307  ;;  %v1874_v21 = vmul.f32 0.5, %v1796_v28 }
 0x482   :  { %vm1323_vm1 = vcmp.eq.s32.totalorder %v1308_v3, 1  ;;  %v1504_v25 = vmul.f32 %v1491_v17, %v1491_v17  ;;  %v4631_v17 = vld [vmem:[#allocation32_spill] sm:$0xff] }
 0x484   :  { %v1538_v0 = vsel %vm1507_vm15, %v1504_v25, 0.0 }
 0x48f   :  { %1387 = vrot.lane.b32.xlu0 %v2107_v40, %s2159_s17  ;;  %v1373_v40 = vsel %vm1321_vm7, %v3397_v11, %v3701_v36  ;;  %v1375_v11 = vsel %vm1323_vm1, %v3459_v23, %v3713_v30  ;;  %v4629_v36 = vld [vmem:[#allocation30_spill] sm:$0xff]  ;;  %v1425_v23 = vpop.permute.xlu1 %1424 }
 0x490   :  { %v1490_v27 = vsub.f32 %v1373_v40, %v4627_v63  ;;  %v1492_v5 = vsub.f32 %v1375_v11, %v4629_v36  ;;  %v1560_v40 = vmul.f32 %v3864_v46, %v3864_v46  ;;  %v2111_v46 = vld [vmem:[%s4344_s0 + $0x40] sm:$0xff] }
 0x491   :  { %v4632_v36 = vld [vmem:[#allocation12_spill] sm:$0xff] }
 0x492   :  { %v1503_v59 = vmul.f32 %v1490_v27, %v1490_v27  ;;  %v1505_v42 = vmul.f32 %v1492_v5, %v1492_v5  ;;  %v1875_v27 = vmul.f32 0.5, %v1797_v50  ;;  %v4633_v5 = vld [vmem:[#allocation8_spill] sm:$0xff]  ;;  %v4637_v50 = vld [vmem:[#allocation59_spill] sm:$0xff] }
 0x493   :  { %v1311_v16 = vpop.permute.xlu1 %1310 }
 0x494   :  { %v1535_v47 = vsel %vm1507_vm15, %v1503_v59, 0.0  ;;  %v1541_v58 = vsel %vm1507_vm15, %v1505_v42, 0.0 }
 0x4a2   :  { %1530 = vadd.xlane.f32.xlu1 %v1529_v37  ;;  %v1563_v37 = vmul.f32 %v4015_v19, %v4015_v19 }
 0x4a6   :  { %1533 = vadd.xlane.f32.xlu1 %v1532_v8  ;;  %v1724_v8 = vsel %vm1690_vm0, %v4631_v17, 0.0 }
 0x4aa   :  { %1536 = vadd.xlane.f32.xlu1 %v1535_v47  ;;  %v1799_v47 = vadd.f32 %v4633_v5, %v4632_v36  ;;  %v4641_v36 = vld [vmem:[#allocation18_spill] sm:$0xff]  ;;  %v4642_v5 = vld [vmem:[#allocation37_spill] sm:$0xff] }
 0x4ac   :  { %v1877_v42 = vmul.f32 0.5, %v1799_v47  ;;  %v1802_v47 = vadd.f32 %v4642_v5, %v4641_v36  ;;  %v1562_v5 = vmul.f32 %v3947_v34, %v3947_v34 }
 0x4ae   :  { %1539 = vadd.xlane.f32.xlu1 %v1538_v0  ;;  %1719 = vadd.xlane.f32.xlu0 %v1718_v55  ;;  %v4082_v41 = vpop.xlane.xlu0 %1713  ;;  %v4634_v0 = vld [vmem:[#allocation34_spill] sm:$0xff] }
 0x4af   :  { %v1727_v55 = vsel %vm1690_vm0, %v4634_v0, 0.0  ;;  %vm1964_vm0 = vcmask 7168  }
 0x4b2   :  { %1542 = vadd.xlane.f32.xlu1 %v1541_v58  ;;  %v1386_v30 = vpop.permute.xlu0 %1385 }
 0x4b3   :  { %v1459_v56 = vsel %vm1251_vm8, %v1386_v30, %v1425_v23  ;;  %vm1324_vm8 = vcmp.eq.s32.totalorder %v1311_v16, 1  ;;  %v4635_v30 = vld [vmem:[#allocation15_spill] sm:$0xff] }
 0x4b4   :  { %v4089_v15 = vsub.f32 %v1459_v56, %v3887_v61  ;;  %v1376_v45 = vsel %vm1324_vm8, %v4102_v54, %v3719_v39  ;;  %v4636_v56 = vld [vmem:[#allocation6_spill] sm:$0xff] }
 0x4b5   :  { %v1493_v7 = vsub.f32 %v1376_v45, %v4630_v13  ;;  %v1800_v28 = vadd.f32 %v4636_v56, %v4635_v30  ;;  %v1561_v13 = vmul.f32 %v3859_v10, %v3859_v10  ;;  %v4638_v10 = vld [vmem:[#allocation14_spill] sm:$0xff]  ;;  %v2116_v56 = vld [vmem:[%s4344_s0 + $0x58] sm:$0xff] }
 0x4b7   :  { %v1506_v61 = vmul.f32 %v1493_v7, %v1493_v7  ;;  %v1878_v16 = vmul.f32 0.5, %v1800_v28  ;;  %v1880_v28 = vmul.f32 0.5, %v1802_v47 }
 0x4b9   :  { %v1544_v31 = vsel %vm1507_vm15, %v1506_v61, 0.0 }
 0x4c3   :  { %1901 = vrot.lane.b32.xlu1 %v1874_v21, %s2159_s17 }
 0x4c4   :  { %1899 = vrot.lane.b32.xlu0 %v1873_v26, %s2159_s17 }
 0x4c7   :  { %1389 = vrot.lane.b32.xlu1 %v2108_v49, %s2159_s17 }
 0x4c8   :  { %1428 = vrot.lane.b32.xlu0 %v2108_v49, %s2160_s24 }
 0x4e3   :  { %v4132_v19 = vpop.xlane.xlu0 %1716 }
 0x4e7   :  { %1722 = vadd.xlane.f32.xlu0 %v1721_v20  ;;  %v1513_v60 = vpop.xlane.xlu0 %1512 }
 0x4e8   :  { %v1809_v45 = vmul.f32 5.0, %v1513_v60 }
 0x4ea   :  { %v1822_v61 = vadd.f32 %v1809_v45, %v1561_v13  ;;  %v4643_v13 = vld [vmem:[#allocation17_spill] sm:$0xff] }
 0x4eb   :  { %1545 = vadd.xlane.f32.xlu1 %v1544_v31  ;;  %v2113_v31 = vld [vmem:[%s4345_s1] sm:$0xff] }
 0x4f6   :  { %v1510_v49 = vpop.xlane.xlu1 %1509 }
 0x4f7   :  { %v1808_v3 = vmul.f32 5.0, %v1510_v49  ;;  %v1860_v49 = vsub.f32 1.0, %v2113_v31 }
 0x4f9   :  { %v1821_v63 = vadd.f32 %v1808_v3, %v1560_v40  ;;  %v2114_v3 = vld [vmem:[%s4344_s0 + $0x50] sm:$0xff] }
 0x4fa   :  { %v1519_v39 = vpop.xlane.xlu1 %1518  ;;  %v4136_v53 = vpop.xlane.xlu0 %1515 }
 0x4fb   :  { %v1811_v33 = vmul.f32 5.0, %v1519_v39  ;;  %v1834_v40 = vadd.f32 %v1821_v63, %v4637_v50  ;;  %v4639_v39 = vld [vmem:[#allocation13_spill] sm:$0xff]  ;;  %v4646_v50 = vld [vmem:[#allocation38_spill] sm:$0xff]  ;;  %v1810_v36 = vmul.f32 5.0, %v4136_v53 }
 0x4fc   :  { %1391 = vrot.lane.b32.xlu1 %v2110_v6, %s2159_s17 }
 0x4fd   :  { %v4120_v44 = vadd.f32 %v1811_v33, %v1563_v37  ;;  %1903 = vrot.lane.b32.xlu0 %v1875_v27, %s2159_s17  ;;  %v1801_v27 = vadd.f32 %v4639_v39, %v4638_v10  ;;  %v1847_v60 = vmul.f32 %v2113_v31, %v1834_v40  ;;  %v4647_v10 = vld [vmem:[#allocation16_spill] sm:$0xff]  ;;  %v4648_v39 = vld [vmem:[#allocation54_spill] sm:$0xff] }
 0x4fe   :  { %v4138_v38 = vpop.xlane.xlu0 %1521  ;;  %v4140_v59 = vpop.permute.xlu1 %1426 }
 0x4ff   :  { %v1879_v17 = vmul.f32 0.5, %v1801_v27  ;;  %v1805_v27 = vadd.f32 %v4648_v39, %v4647_v10  ;;  %v1812_v9 = vmul.f32 5.0, %v4138_v38  ;;  %v2119_v38 = vld [vmem:[%s4345_s1 + $0x20] sm:$0xff] }
 0x500   :  { %1430 = vrot.lane.b32.xlu1 %v2110_v6, %s2160_s24  ;;  %v4640_v6 = vld [vmem:[#allocation39_spill] sm:$0xff] }
 0x501   :  { %v1835_v1 = vadd.f32 %v1822_v61, %v4640_v6  ;;  %v4644_v61 = vld [vmem:[#allocation7_spill] sm:$0xff]  ;;  %v4649_v6 = vld [vmem:[#allocation20_spill] sm:$0xff] }
 0x502   :  { %v4142_v11 = vpop.xlane.xlu0 %1524  ;;  %v1803_v31 = vadd.f32 %v4644_v61, %v4643_v13 }
 0x504   :  { %1905 = vrot.lane.b32.xlu1 %v1876_v14, %s2159_s17 }
 0x506   :  { %v4150_v58 = vpop.xlane.xlu0 %1527 }
 0x508   :  { %1393 = vrot.lane.b32.xlu1 %v2111_v46, %s2159_s17 }
 0x50a   :  { %v4161_v21 = vpop.permute.xlu0 %1387 }
 0x50b   :  { %v1460_v52 = vsel %vm1252_vm3, %v4161_v21, %v4140_v59  ;;  %vm2001_vm3 = vcmask 0  }
 0x50c   :  { %1432 = vrot.lane.b32.xlu1 %v2111_v46, %s2160_s24  ;;  %v2115_v46 = vld [vmem:[%s4345_s1 + $0x8] sm:$0xff] }
 0x50d   :  { %v1861_v63 = vsub.f32 1.0, %v2115_v46 }
 0x51c   :  { %1725 = vadd.xlane.f32.xlu0 %v1724_v8 }
 0x52f   :  { %v4146_v25 = vpop.xlane.xlu1 %1530 }
 0x530   :  { %1728 = vadd.xlane.f32.xlu1 %v1727_v55  ;;  %v1848_v55 = vmul.f32 %v2115_v46, %v1835_v1  ;;  %v4650_v1 = vld [vmem:[#allocation35_spill] sm:$0xff]  ;;  %v1883_v46 = vmul.f32 0.5, %v1805_v27 }
 0x531   :  { %v2118_v27 = vld [vmem:[%s4345_s1 + $0x18] sm:$0xff] }
 0x532   :  { %1907 = vrot.lane.b32.xlu0 %v1877_v42, %s2159_s17 }
 0x533   :  { %v4153_v23 = vpop.xlane.xlu1 %1533 }
 0x536   :  { %1434 = vrot.lane.b32.xlu0 %v2112_v57, %s2160_s24 }
 0x537   :  { %v4163_v26 = vpop.xlane.xlu1 %1536 }
 0x53a   :  { %1909 = vrot.lane.b32.xlu0 %v1878_v16, %s2159_s17 }
 0x53b   :  { %v4168_v7 = vpop.xlane.xlu1 %1539  ;;  %v4170_v20 = vpop.xlane.xlu0 %1719 }
 0x53e   :  { %1397 = vrot.lane.b32.xlu0 %v2114_v3, %s2159_s17 }
 0x53f   :  { %v4182_v37 = vpop.xlane.xlu1 %1542  ;;  %v1900_v33 = vpop.permute.xlu0 %1899 }
 0x540   :  { %v1938_v14 = vmul.f32 %v1900_v33, %v1860_v49  ;;  %v4645_v49 = vld [vmem:[#allocation21_spill] sm:$0xff] }
 0x541   :  { %1395 = vrot.lane.b32.xlu1 %v2112_v57, %s2159_s17  ;;  %v1804_v40 = vadd.f32 %v4646_v50, %v4645_v49 }
 0x542   :  { %1436 = vrot.lane.b32.xlu0 %v2114_v3, %s2160_s24  ;;  %v1951_v0 = vadd.f32 %v1938_v14, %v1847_v60  ;;  %v1881_v3 = vmul.f32 0.5, %v1803_v31  ;;  %v1806_v14 = vadd.f32 %v4650_v1, %v4649_v6  ;;  %v4652_v60 = vld [vmem:[#allocation57_spill] sm:$0xff]  ;;  %v1815_v1 = vmul.f32 5.0, %v4146_v25 }
 0x543   :  { %v1902_v8 = vpop.permute.xlu1 %1901  ;;  %v1882_v33 = vmul.f32 0.5, %v1804_v40  ;;  %v1429_v47 = vpop.permute.xlu0 %1428 }
 0x544   :  { %v1939_v42 = vmul.f32 %v1902_v8, %v1861_v63  ;;  %v1965_v57 = vsel %vm1964_vm0, %v1951_v0, 0.0  ;;  %v4651_v63 = vld [vmem:[#allocation19_spill] sm:$0xff]  ;;  %v1884_v8 = vmul.f32 0.5, %v1806_v14  ;;  %v1823_v0 = vadd.f32 %v1810_v36, %v1562_v5 }
 0x545   :  { %1911 = vrot.lane.b32.xlu1 %v1879_v17, %s2159_s17  ;;  %v1807_v17 = vadd.f32 %v4652_v60, %v4651_v63 }
 0x546   :  { %v1952_v30 = vadd.f32 %v1939_v42, %v1848_v55  ;;  %1399 = vrot.lane.b32.xlu0 %v2116_v56, %s2159_s17 }
 0x547   :  { %v1390_v55 = vpop.permute.xlu1 %1389 }
 0x548   :  { %v1966_v16 = vsel %vm1964_vm0, %v1952_v30, 0.0  ;;  %v4653_v30 = vld [vmem:[#allocation46_spill] sm:$0xff] }
 0x549   :  { %v1967_v45 = vadd.f32 %v1966_v16, %v1965_v57  ;;  %1438 = vrot.lane.b32.xlu1 %v2116_v56, %s2160_s24  ;;  %v1836_v56 = vadd.f32 %v1823_v0, %v4653_v30  ;;  %v4656_v0 = vld [vmem:[#allocation41_spill] sm:$0xff] }
 0x54a   :  { %1913 = vrot.lane.b32.xlu0 %v1880_v28, %s2159_s17  ;;  %v2117_v28 = vld [vmem:[%s4345_s1 + $0x10] sm:$0xff] }
 0x54b   :  { %v1862_v57 = vsub.f32 1.0, %v2117_v28  ;;  %v1849_v61 = vmul.f32 %v2117_v28, %v1836_v56  ;;  %v1864_v28 = vsub.f32 1.0, %v2119_v38 }
 0x54d   :  { %1401 = vrot.lane.b32.xlu1 %v4102_v54, %s2159_s17 }
 0x54e   :  { %1440 = vrot.lane.b32.xlu0 %v4102_v54, %s2160_s24  ;;  %v1885_v54 = vmul.f32 0.5, %v1807_v17 }
 0x551   :  { %1915 = vrot.lane.b32.xlu1 %v1881_v3, %s2159_s17  ;;  %v4654_v3 = vld [vmem:[#allocation40_spill] sm:$0xff] }
 0x552   :  { %1917 = vrot.lane.b32.xlu0 %v1882_v33, %s2159_s17  ;;  %v1837_v10 = vadd.f32 %v4120_v44, %v4654_v3  ;;  %v1863_v33 = vsub.f32 1.0, %v2118_v27 }
 0x555   :  { %1919 = vrot.lane.b32.xlu1 %v1883_v46, %s2159_s17 }
 0x556   :  { %1921 = vrot.lane.b32.xlu0 %v1884_v8, %s2159_s17 }
 0x559   :  { %1923 = vrot.lane.b32.xlu1 %v1885_v54, %s2159_s17  ;;  %v4655_v54 = vld [vmem:[#allocation42_spill] sm:$0xff] }
 0x55a   :  { %v1552_v36 = vsub.f32 %v1460_v52, %v4655_v54  ;;  %v2121_v54 = vld [vmem:[%s4345_s1 + $0x30] sm:$0xff] }
 0x55c   :  { %v1565_v56 = vmul.f32 %v1552_v36, %v1552_v36  ;;  %v1866_v36 = vsub.f32 1.0, %v2121_v54 }
 0x574   :  { %v4223_v42 = vpop.xlane.xlu0 %1722 }
 0x578   :  { %v4229_v16 = vpop.xlane.xlu1 %1545  ;;  %v1904_v13 = vpop.permute.xlu0 %1903 }
 0x579   :  { %v1940_v53 = vmul.f32 %v1904_v13, %v1862_v57  ;;  %v1813_v57 = vmul.f32 5.0, %v4142_v11 }
 0x57b   :  { %v1953_v31 = vadd.f32 %v1940_v53, %v1849_v61  ;;  %v1826_v12 = vadd.f32 %v1813_v57, %v1565_v56  ;;  %v1461_v61 = vsel %vm1253_vm4, %v1390_v55, %v1429_v47 }
 0x57c   :  { %v1392_v49 = vpop.permute.xlu1 %1391 }
 0x57d   :  { %v1968_v34 = vsel %vm1964_vm0, %v1953_v31, 0.0  ;;  %v1839_v31 = vadd.f32 %v1826_v12, %v3921_v62  ;;  %v1814_v62 = vmul.f32 5.0, %v4150_v58 }
 0x57e   :  { %v1969_v50 = vadd.f32 %v1968_v34, %v1967_v45  ;;  %v1850_v45 = vmul.f32 %v2118_v27, %v1837_v10 }
 0x580   :  { %v1431_v40 = vpop.permute.xlu1 %1430 }
 0x581   :  { %v1462_v39 = vsel %vm1254_vm9, %v1392_v49, %v1431_v40  ;;  %v2120_v49 = vld [vmem:[%s4345_s1 + $0x28] sm:$0xff] }
 0x582   :  { %v1554_v6 = vsub.f32 %v1462_v39, %v3910_v2  ;;  %v1564_v2 = vmul.f32 %v4089_v15, %v4089_v15  ;;  %v1865_v34 = vsub.f32 1.0, %v2120_v49  ;;  %v4657_v40 = vld [vmem:[#allocation33_spill] sm:$0xff]  ;;  %v1852_v39 = vmul.f32 %v2120_v49, %v1839_v31 }
 0x583   :  { %v1553_v3 = vsub.f32 %v1461_v61, %v4657_v40 }
 0x584   :  { %v1567_v14 = vmul.f32 %v1554_v6, %v1554_v6  ;;  %v1906_v46 = vpop.permute.xlu1 %1905  ;;  %v1825_v25 = vadd.f32 %v1812_v9, %v1564_v2 }
 0x585   :  { %v1941_v63 = vmul.f32 %v1906_v46, %v1863_v33  ;;  %v1566_v6 = vmul.f32 %v1553_v3, %v1553_v3  ;;  %v4664_v3 = vld [vmem:[#allocation53_spill] sm:$0xff] }
 0x586   :  { %v1828_v60 = vadd.f32 %v1815_v1, %v1567_v14  ;;  %v1838_v30 = vadd.f32 %v1825_v25, %v4656_v0  ;;  %v2122_v0 = vld [vmem:[%s4345_s1 + $0x38] sm:$0xff] }
 0x587   :  { %v1954_v17 = vadd.f32 %v1941_v63, %v1850_v45  ;;  %v1827_v1 = vadd.f32 %v1814_v62, %v1566_v6  ;;  %v2124_v62 = vld [vmem:[%s4345_s1 + $0x40] sm:$0xff] }
 0x588   :  { %v1851_v59 = vmul.f32 %v2119_v38, %v1838_v30  ;;  %v1394_v11 = vpop.permute.xlu1 %1393  ;;  %v1841_v25 = vadd.f32 %v1828_v60, %v4082_v41  ;;  %v1867_v30 = vsub.f32 1.0, %v2122_v0 }
 0x589   :  { %v1970_v44 = vsel %vm1964_vm0, %v1954_v17, 0.0  ;;  %v1840_v2 = vadd.f32 %v1827_v1, %v4009_v22 }
 0x58a   :  { %v1971_v8 = vadd.f32 %v1970_v44, %v1969_v50  ;;  %v4660_v44 = vld [vmem:[#allocation45_spill] sm:$0xff]  ;;  %v1854_v24 = vmul.f32 %v2122_v0, %v1841_v25 }
 0x58b   :  { %v1853_v18 = vmul.f32 %v2121_v54, %v1840_v2  ;;  %v1820_v2 = vmul.f32 5.0, %v4229_v16 }
 0x58c   :  { %v1433_v29 = vpop.permute.xlu1 %1432 }
 0x58d   :  { %v1463_v17 = vsel %vm1255_vm5, %v1394_v11, %v1433_v29 }
 0x5a9   :  { %v4252_v5 = vpop.xlane.xlu0 %1725 }
 0x5ad   :  { %v1908_v32 = vpop.permute.xlu0 %1907 }
 0x5ae   :  { %v1942_v21 = vmul.f32 %v1908_v32, %v1864_v28  ;;  %v4661_v28 = vld [vmem:[#allocation43_spill] sm:$0xff] }
 0x5b0   :  { %v1955_v15 = vadd.f32 %v1942_v21, %v1851_v59  ;;  %v1816_v21 = vmul.f32 5.0, %v4153_v23  ;;  %v1818_v23 = vmul.f32 5.0, %v4168_v7 }
 0x5b1   :  { %v1435_v13 = vpop.permute.xlu0 %1434 }
 0x5b2   :  { %v1972_v53 = vsel %vm1964_vm0, %v1955_v15, 0.0  ;;  %v1817_v15 = vmul.f32 5.0, %v4163_v26 }
 0x5b3   :  { %v1973_v50 = vadd.f32 %v1972_v53, %v1971_v8  ;;  %v1555_v8 = vsub.f32 %v1463_v17, %v4660_v44 }
 0x5b5   :  { %v1910_v10 = vpop.permute.xlu0 %1909  ;;  %v1568_v60 = vmul.f32 %v1555_v8, %v1555_v8 }
 0x5b6   :  { %v1943_v27 = vmul.f32 %v1910_v10, %v1865_v34 }
 0x5b7   :  { %v1829_v4 = vadd.f32 %v1816_v21, %v1568_v60 }
 0x5b8   :  { %v1956_v33 = vadd.f32 %v1943_v27, %v1852_v39  ;;  %v2123_v39 = vld [vmem:[%s4345_s1 + $0x48] sm:$0xff] }
 0x5b9   :  { %v1398_v43 = vpop.permute.xlu0 %1397  ;;  %v1869_v27 = vsub.f32 1.0, %v2123_v39  ;;  %v1842_v63 = vadd.f32 %v1829_v4, %v4132_v19  ;;  %v2126_v19 = vld [vmem:[%s4345_s1 + $0x50] sm:$0xff] }
 0x5ba   :  { %v1974_v47 = vsel %vm1964_vm0, %v1956_v33, 0.0  ;;  %v1819_v33 = vmul.f32 5.0, %v4182_v37  ;;  %v4666_v37 = vld [vmem:[#allocation48_spill] sm:$0xff] }
 0x5bb   :  { %v1975_v55 = vadd.f32 %v1974_v47, %v1973_v50  ;;  %v1855_v0 = vmul.f32 %v2124_v62, %v1842_v63 }
 0x5bd   :  { %v4270_v14 = vpop.xlane.xlu1 %1728  ;;  %v1437_v46 = vpop.permute.xlu0 %1436 }
 0x5be   :  { %v1465_v22 = vsel %vm1257_vm11, %v1398_v43, %v1437_v46 }
 0x5bf   :  { %v1557_v57 = vsub.f32 %v1465_v22, %v4661_v28 }
 0x5c1   :  { %v1396_v9 = vpop.permute.xlu1 %1395  ;;  %v1400_v52 = vpop.permute.xlu0 %1399 }
 0x5c2   :  { %v1464_v58 = vsel %vm1256_vm10, %v1396_v9, %v1435_v13  ;;  %v2125_v9 = vld [vmem:[%s4345_s1 + $0x58] sm:$0xff] }
 0x5c3   :  { %v1556_v41 = vsub.f32 %v1464_v58, %v3940_v51  ;;  %v1570_v51 = vmul.f32 %v1557_v57, %v1557_v57 }
 0x5c5   :  { %v1912_v56 = vpop.permute.xlu1 %1911  ;;  %v1914_v38 = vpop.permute.xlu0 %1913  ;;  %v1569_v32 = vmul.f32 %v1556_v41, %v1556_v41  ;;  %v1831_v1 = vadd.f32 %v1818_v23, %v1570_v51 }
 0x5c6   :  { %v1944_v12 = vmul.f32 %v1912_v56, %v1866_v36  ;;  %v1945_v59 = vmul.f32 %v1914_v38, %v1867_v30 }
 0x5c7   :  { %v1830_v31 = vadd.f32 %v1817_v15, %v1569_v32  ;;  %v1844_v22 = vadd.f32 %v1831_v1, %v4223_v42 }
 0x5c8   :  { %v1957_v13 = vadd.f32 %v1944_v12, %v1853_v18  ;;  %v1958_v61 = vadd.f32 %v1945_v59, %v1854_v24 }
 0x5c9   :  { %v1439_v35 = vpop.permute.xlu1 %1438  ;;  %v1441_v53 = vpop.permute.xlu0 %1440  ;;  %v1843_v45 = vadd.f32 %v1830_v31, %v4170_v20  ;;  %v1870_v20 = vsub.f32 1.0, %v2126_v19  ;;  %v1857_v57 = vmul.f32 %v2126_v19, %v1844_v22 }
 0x5ca   :  { %v1976_v49 = vsel %vm1964_vm0, %v1957_v13, 0.0  ;;  %v1466_v50 = vsel %vm1258_vm12, %v1400_v52, %v1439_v35  ;;  %v1978_v26 = vsel %vm1964_vm0, %v1958_v61, 0.0  ;;  %v1871_v52 = vsub.f32 1.0, %v2125_v9 }
 0x5cb   :  { %v1977_v40 = vadd.f32 %v1976_v49, %v1975_v55  ;;  %v1558_v10 = vsub.f32 %v1466_v50, %v4664_v3  ;;  %v1868_v55 = vsub.f32 1.0, %v2124_v62  ;;  %v1856_v36 = vmul.f32 %v2123_v39, %v1843_v45 }
 0x5cd   :  { %v1979_v6 = vadd.f32 %v1978_v26, %v1977_v40  ;;  %v1571_v29 = vmul.f32 %v1558_v10, %v1558_v10  ;;  %v1402_v43 = vpop.permute.xlu1 %1401  ;;  %v1918_v47 = vpop.permute.xlu0 %1917 }
 0x5ce   :  { %v1467_v46 = vsel %vm1259_vm13, %v1402_v43, %v1441_v53  ;;  %v1947_v8 = vmul.f32 %v1918_v47, %v1869_v27 }
 0x5cf   :  { %v1832_v17 = vadd.f32 %v1819_v33, %v1571_v29  ;;  %v1559_v44 = vsub.f32 %v1467_v46, %v4666_v37 }
 0x5d0   :  { %v1960_v60 = vadd.f32 %v1947_v8, %v1856_v36 }
 0x5d1   :  { %v1572_v25 = vmul.f32 %v1559_v44, %v1559_v44  ;;  %v1916_v58 = vpop.permute.xlu1 %1915  ;;  %v1845_v48 = vadd.f32 %v1832_v17, %v4252_v5  ;;  %v1922_v54 = vpop.permute.xlu0 %1921  ;;  %v2127_v5 = vld [vmem:[%s4345_s1 + $0x60] sm:$0xff]  ;;  %s2162_s1 = smov [#allocation2]  }
 0x5d2   :  { %v1946_v30 = vmul.f32 %v1916_v58, %v1868_v55  ;;  %v1949_v16 = vmul.f32 %v1922_v54, %v1871_v52  ;;  %v1872_v38 = vsub.f32 1.0, %v2127_v5  ;;  %v1982_v42 = vsel %vm1964_vm0, %v1960_v60, 0.0  ;;  %s2009_s21 = sshll.u32 %s2162_s1, 4  ;;  %s2010_s21 = int_to_ptr.vmem [resolvable:$true] %s2009_s21 }
 0x5d3   :  { %v1833_v41 = vadd.f32 %v1820_v2, %v1572_v25  ;;  %v1858_v18 = vmul.f32 %v2125_v9, %v1845_v48  ;;  %s2128_s23 = scalar_lea.vmem %s2010_s21, 16  ;;  %s2132_s13 = scalar_lea.vmem %s2010_s21, 32 }
 0x5d4   :  { %v1959_v56 = vadd.f32 %v1946_v30, %v1855_v0  ;;  %p2129_p0 = scmp.ne.s32.totalorder %s2010_s21, %s2128_s23  ;;  %p2133_p1 = scmp.lt.s32.totalorder %s2010_s21, %s2010_s21 }
 0x5d5   :  { %v1920_v24 = vpop.permute.xlu1 %1919  ;;  %v1846_v12 = vadd.f32 %v1833_v41, %v4270_v14  ;;  %v1962_v21 = vadd.f32 %v1949_v16, %v1858_v18  ;;  %p2134_p2 = scmp.lt.s32.totalorder %s2132_s13, %s2128_s23 }
 0x5d6   :  { %v1980_v28 = vsel %vm1964_vm0, %v1959_v56, 0.0  ;;  %v1948_v32 = vmul.f32 %v1920_v24, %v1870_v20 }
 0x5d7   :  { %v1981_v59 = vadd.f32 %v1980_v28, %v1979_v6  ;;  %v1859_v35 = vmul.f32 %v2127_v5, %v1846_v12  ;;  %v1986_v31 = vsel %vm1964_vm0, %v1962_v21, 0.0  ;;  %p2135_p3 = por %p2134_p2, %p2133_p1 }
 0x5d8   :  { %v1961_v15 = vadd.f32 %v1948_v32, %v1857_v57 }
 0x5d9   :  { %v1983_v13 = vadd.f32 %v1982_v42, %v1981_v59  ;;  %v1924_v61 = vpop.permute.xlu1 %1923  ;;  %p2136_p4 = pnand %p2135_p3, %p2129_p0 }
 0x5da   :  { %v1984_v4 = vsel %vm1964_vm0, %v1961_v15, 0.0  ;;  %v1950_v53 = vmul.f32 %v1924_v61, %v1872_v38 }
 0x5db   :  { %v1985_v51 = vadd.f32 %v1984_v4, %v1983_v13 }
 0x5dc   :  { %v1963_v49 = vadd.f32 %v1950_v53, %v1859_v35 }
 0x5dd   :  { %v1987_v34 = vadd.f32 %v1986_v31, %v1985_v51 }
 0x5de   :  { %v1988_v11 = vsel %vm1964_vm0, %v1963_v49, 0.0 }
 0x5df   :  { %v1989_v50 = vadd.f32 %v1988_v11, %v1987_v34 }
 0x5e1   :  { %1990 = vadd.xlane.f32.xlu0 %v1989_v50 }
 0x66e   :  { %v1991_v14 = vpop.xlane.xlu0 %1990 }
 0x66f   :  { %v1992_v40 = vrot.slane %v1991_v14, 4 }
 0x671   :  { %v1993_v3 = vadd.f32 %v1992_v40, %v1991_v14 }
 0x673   :  { %v1994_v10 = vrot.slane %v1993_v3, 2 }
 0x675   :  { %v1995_v23 = vadd.f32 %v1994_v10, %v1993_v3 }
 0x677   :  { %v1996_v26 = vrot.slane %v1995_v23, 1 }
 0x679   :  { %v1997_v39 = vadd.f32 %v1996_v26, %v1995_v23 }
 0x67b   :  { %2017 = vpush %v1997_v39 }
 0x6ac   :  { %s2018_s22 = spop %2017 }
 0x6ad   :  { %v1999_v27 = vstv %s2018_s22 }
 0x6ae   :  { %v2000_v33 = vmul.f32 0.5, %v1999_v27 }
 0x6b0   :  { %2002 = vst.msk [vmem:[#allocation2] sm:$0x1] %vm2001_vm3, %v2000_v33 }
 0x6b1   :  { %2139 = shalt.err (!%p2136_p4)
}
 0x6b2   :  { %s2140_s27 = scalar_lea.hbm %s4346_s2, 16 }
 0x6b3   :  { %p2141_p5 = scmp.ne.s32.totalorder %s4346_s2, %s2140_s27  ;;  %p2144_p6 = scmp.lt.u32.totalorder %s2140_s27, %s4346_s2 }
 0x6b5   :  { %p2146_p7 = pnand %p2144_p6, %p2141_p5 }
 0x6b7   :  { %2149 = shalt.err (!%p2146_p7)
}
 0x6b8   :  { %2012 = dma.vmem_to_hbm [thread:$0]  %s2010_s21, 16, %s4346_s2, [#allocation3]  }
 0x6b9   :  { %2150 = dma.done.wait [#allocation3], 16  }
 0x6ba   :  { %2151 = vsyncadd [#allocation3], 4294967280 }
 0x6bb   :  { %2016 = vsyncpa [#allocation3], 1 }

</bundles_post_ra>
